<compile_context>
chip_gen: v7x
topology: tpu7x:2x2x1
jax: 0.10.0
libtpu: 0.0.40
codegen_flags: <defaults>
</compile_context>

<pallas_src>
import functools

import jax
import jax.numpy as jnp
from jax.experimental import pallas as pl
from jax.experimental.pallas import tpu as pltpu


def _sigmoid(z):
    # One EUP op (tanh) per element instead of exp + full-precision divide.
    return 0.5 * (jnp.tanh(0.5 * z) + 1.0)


def _round_up(x, m):
    return (x + m - 1) // m * m


def _pick_tm(n):
    """Row-tile size: large tiles for long N (amortize ~0.35us/step overhead
    on v5e/v6e), but keep >=4 grid steps when possible (>=2 per v7x core so
    the double-buffered pipeline actually overlaps DMA with compute)."""
    for tm in (1024, 512, 256, 128):
        if n // tm >= 4:
            return tm
    return 128


def _vmem_capacity_bytes():
    try:
        return int(pltpu.get_tpu_info().vmem_capacity_bytes)
    except Exception:
        return 64 << 20  # conservative: v7x per-TensorCore VMEM


def _mlp_decoder_kernel(s_ref,            # SMEM (3,)  [s_1to2, s_1to3, s_2to3]
                        h_ref,            # VMEM (tm, hdim)   bf16
                        w1_ref, b1_ref,   # VMEM (hdim, hdim) bf16 / (1, hdim) f32
                        w2_ref, b2_ref,   # VMEM (hdim, hdim) bf16 / (1, hdim) f32
                        w3_ref, b3_ref,   # VMEM (hdim, ncp)  bf16 / (1, ncp) f32
                        out_ref):         # VMEM (tm, ncp)    bf16
    s12 = s_ref[0]
    s13 = s_ref[1]
    s23 = s_ref[2]

    hb = h_ref[...]                    # bf16, feeds the MXU directly
    h = hb.astype(jnp.float32)         # f32 copy for the skip-connection adds

    # h1 = sigmoid(layer1(h))
    z1 = jnp.dot(hb, w1_ref[...], preferred_element_type=jnp.float32) + b1_ref[...]
    h1 = _sigmoid(z1)

    # h2 = sigmoid(layer2(h1 + s12 * h))
    h2_in = (h1 + s12 * h).astype(jnp.bfloat16)
    z2 = jnp.dot(h2_in, w2_ref[...], preferred_element_type=jnp.float32) + b2_ref[...]
    h2 = _sigmoid(z2)

    # out = sigmoid(final_layer(h2 + s13 * h + s23 * h1))
    fin = (h2 + s13 * h + s23 * h1).astype(jnp.bfloat16)
    z3 = jnp.dot(fin, w3_ref[...], preferred_element_type=jnp.float32) + b3_ref[...]
    out_ref[...] = _sigmoid(z3).astype(out_ref.dtype)


def prepare_decoder_params(w1, b1, w2, b2, w3, b3, skips):
    """One-time model setup (NOT in the per-call hot path): pad nclass to a
    lane-dense multiple of 128 and cast weights to bf16."""
    hdim, nclass = w3.shape
    ncp = _round_up(nclass, 128)
    w3p = jnp.pad(w3, ((0, 0), (0, ncp - nclass))) if ncp != nclass else w3
    b3p = jnp.pad(b3.reshape(1, -1), ((0, 0), (0, ncp - nclass)))
    return dict(
        w1=w1.astype(jnp.bfloat16), b1=b1.reshape(1, hdim).astype(jnp.float32),
        w2=w2.astype(jnp.bfloat16), b2=b2.reshape(1, hdim).astype(jnp.float32),
        w3=w3p.astype(jnp.bfloat16), b3=b3p.astype(jnp.float32),
        skips=skips.astype(jnp.float32), nclass=int(nclass),
    )


@functools.partial(jax.jit,
                   static_argnames=("nclass", "tm", "single_buffer_weights"))
def _mlp_decoder_call(h, w1, b1, w2, b2, w3, b3, skips, *, nclass, tm,
                      single_buffer_weights):
    N, hdim = h.shape
    ncp = w3.shape[1]

    # Stream activations in bf16 (half the HBM read of a mem-bound kernel).
    # Ideally the producer already hands us bf16; cast here only if needed.
    if h.dtype != jnp.bfloat16:
        h = h.astype(jnp.bfloat16)

    grid = (pl.cdiv(N, tm),)   # no row padding: Pallas masks the ragged tail

    # Grid-invariant weight/bias blocks stay fully VMEM-resident; single-buffer
    # them so they don't take 2x VMEM (matters on v7x 64 MiB once hdim grows).
    # TODO(synk): for very large hdim, add a K-reduction ("arbitrary") grid
    # axis so the weights tile instead of living whole in VMEM.
    if single_buffer_weights:
        full = lambda shape: pl.BlockSpec(shape, lambda i: (0, 0),
                                          pipeline_mode=pl.Buffered(1))
    else:
        full = lambda shape: pl.BlockSpec(shape, lambda i: (0, 0))

    wbuf = 1 if single_buffer_weights else 2
    vmem_need = (2 * tm * hdim * 2                          # bf16 h tiles, 2 bufs
                 + 2 * tm * ncp * 2                         # bf16 out tiles, 2 bufs
                 + wbuf * (2 * hdim * hdim + hdim * ncp) * 2  # bf16 weights
                 + wbuf * (2 * hdim + ncp) * 4)             # f32 biases
    cap = _vmem_capacity_bytes()
    vmem_limit = int(min(max(32 << 20, 2 * vmem_need), (3 * cap) // 4))

    cost = pl.CostEstimate(
        flops=2 * N * hdim * (2 * hdim + ncp),
        transcendentals=N * (2 * hdim + ncp),
        bytes_accessed=(N * hdim * 2 + N * ncp * 2
                        + (2 * hdim * hdim + hdim * ncp) * 2
                        + (2 * hdim + ncp) * 4 + 3 * 4),
    )

    out = pl.pallas_call(
        _mlp_decoder_kernel,
        out_shape=jax.ShapeDtypeStruct((N, ncp), jnp.bfloat16),
        grid_spec=pltpu.PrefetchScalarGridSpec(
            num_scalar_prefetch=0,
            grid=grid,
            in_specs=[
                pl.BlockSpec(memory_space=pltpu.MemorySpace.SMEM),   # skips (3,)
                pl.BlockSpec((tm, hdim), lambda i: (i, 0)),          # h row tile
                full((hdim, hdim)), full((1, hdim)),                 # layer1
                full((hdim, hdim)), full((1, hdim)),                 # layer2
                full((hdim, ncp)),  full((1, ncp)),                  # final layer
            ],
            out_specs=pl.BlockSpec((tm, ncp), lambda i: (i, 0)),
        ),
        compiler_params=pltpu.CompilerParams(
            dimension_semantics=("parallel",),   # rows shard across v7x cores
            vmem_limit_bytes=vmem_limit),
        cost_estimate=cost,
    )(skips, h, w1, b1, w2, b2, w3, b3)

    # Slice off the padded (sigmoid(0)=0.5) class columns; tiny (N, nclass) op.
    return out[:, :nclass]


def mlp_decoder(h, params, *, tm=None, out_dtype=jnp.float32):
    """h: [N, hdim] (bf16 preferred, f32 accepted); params from
    prepare_decoder_params. Returns [N, nclass] in out_dtype."""
    if tm is None:
        tm = _pick_tm(h.shape[0])
    args = (h, params["w1"], params["b1"], params["w2"], params["b2"],
            params["w3"], params["b3"], params["skips"])
    kw = dict(nclass=params["nclass"], tm=tm)
    try:
        out = _mlp_decoder_call(*args, single_buffer_weights=True, **kw)
    except Exception:
        # Fallback for jax builds without Buffered(1) support on pallas_call
        # BlockSpecs; weights then simply keep the default double buffering.
        out = _mlp_decoder_call(*args, single_buffer_weights=False, **kw)
    return out.astype(out_dtype)


def _reference(h, w1, b1, w2, b2, w3, b3, skips):
    s12, s13, s23 = skips[0], skips[1], skips[2]
    h1 = jax.nn.sigmoid(h @ w1 + b1)
    h2 = jax.nn.sigmoid((h1 + s12 * h) @ w2 + b2)
    fin = h2 + s13 * h + s23 * h1
    return jax.nn.sigmoid(fin @ w3 + b3)


if __name__ == "__main__":
    # 512 rows -> tm=128, grid=(4,): 2 steps per v7x TensorCore, pipelined.
    N, hdim, nclass = 512, 128, 16
    key = jax.random.PRNGKey(0)
    kh, k1, k2, k3, kb1, kb2, kb3, ks = jax.random.split(key, 8)

    h = jax.random.normal(kh, (N, hdim), dtype=jnp.float32)

    # Deterministic "PyTorch-Linear-like" init (uniform +/- 1/sqrt(fan_in)),
    # stored as [in, out] (transposed from torch's [out, in]).
    def lin_init(kw, kb, fan_in, fan_out):
        bound = 1.0 / jnp.sqrt(jnp.float32(fan_in))
        w = jax.random.uniform(kw, (fan_in, fan_out), jnp.float32, -bound, bound)
        b = jax.random.uniform(kb, (fan_out,), jnp.float32, -bound, bound)
        return w, b

    w1, b1 = lin_init(k1, kb1, hdim, hdim)
    w2, b2 = lin_init(k2, kb2, hdim, hdim)
    w3, b3 = lin_init(k3, kb3, hdim, nclass)
    # skip_weight_1_to_2, skip_weight_1_to_3, skip_weight_2_to_3 ~ U[0,1)
    skips = jax.random.uniform(ks, (3,), jnp.float32)

    # One-time weight prep (bf16 cast + lane padding) outside the hot path.
    params = prepare_decoder_params(w1, b1, w2, b2, w3, b3, skips)

    # Producers should hand the decoder bf16 activations; cast once here.
    hb = h.astype(jnp.bfloat16)

    out = mlp_decoder(hb, params)
    out = jax.block_until_ready(out)

    ref = _reference(h, w1, b1, w2, b2, w3, b3, skips)
    assert out.shape == (N, nclass)
    assert out.dtype == jnp.float32
    # bf16 streaming activations + bf16 MXU operands + bf16 output store
    # => tolerate ~1e-2-level deviation vs. the f32 reference.
    assert jnp.allclose(out, ref, atol=3e-2, rtol=3e-2), "mismatch vs reference"

    print("KERNEL_OK")
</pallas_src>

<mosaic_0001>
module attributes {stable_mosaic.version = 11 : i64} {
  func.func @_mlp_decoder_kernel(%arg0: i32, %arg1: memref<3xf32, #tpu.memory_space<smem>>, %arg2: memref<128x128xbf16, #tpu.memory_space<vmem>>, %arg3: memref<128x128xbf16, #tpu.memory_space<vmem>>, %arg4: memref<1x128xf32, #tpu.memory_space<vmem>>, %arg5: memref<128x128xbf16, #tpu.memory_space<vmem>>, %arg6: memref<1x128xf32, #tpu.memory_space<vmem>>, %arg7: memref<128x128xbf16, #tpu.memory_space<vmem>>, %arg8: memref<1x128xf32, #tpu.memory_space<vmem>>, %arg9: memref<128x128xbf16, #tpu.memory_space<vmem>>) attributes {dimension_semantics = [#tpu.dimension_semantics<parallel>], iteration_bounds = array<i64: 4>, scalar_prefetch = 0 : i64, scratch_operands = 0 : i64, tpu.core_type = #tpu.core_type<tc>, window_params = [{transform_indices = @transform_0, window_bounds = array<i64: 3>}, {transform_indices = @transform_1, window_bounds = array<i64: 128, 128>}, {pipeline_mode = #tpu.pipeline_mode<synchronous>, transform_indices = @transform_2, window_bounds = array<i64: 128, 128>}, {pipeline_mode = #tpu.pipeline_mode<synchronous>, transform_indices = @transform_3, window_bounds = array<i64: 1, 128>}, {pipeline_mode = #tpu.pipeline_mode<synchronous>, transform_indices = @transform_4, window_bounds = array<i64: 128, 128>}, {pipeline_mode = #tpu.pipeline_mode<synchronous>, transform_indices = @transform_5, window_bounds = array<i64: 1, 128>}, {pipeline_mode = #tpu.pipeline_mode<synchronous>, transform_indices = @transform_6, window_bounds = array<i64: 128, 128>}, {pipeline_mode = #tpu.pipeline_mode<synchronous>, transform_indices = @transform_7, window_bounds = array<i64: 1, 128>}, {transform_indices = @transform_8, window_bounds = array<i64: 128, 128>}]} {
    %c0 = arith.constant 0 : index
    %0 = memref.load %arg1[%c0] : memref<3xf32, #tpu.memory_space<smem>>
    %c1 = arith.constant 1 : index
    %1 = memref.load %arg1[%c1] : memref<3xf32, #tpu.memory_space<smem>>
    %c2 = arith.constant 2 : index
    %2 = memref.load %arg1[%c2] : memref<3xf32, #tpu.memory_space<smem>>
    %c0_0 = arith.constant 0 : index
    %c0_1 = arith.constant 0 : index
    %3 = vector.load %arg2[%c0_0, %c0_1] : memref<128x128xbf16, #tpu.memory_space<vmem>>, vector<128x128xbf16>
    %4 = arith.extf %3 : vector<128x128xbf16> to vector<128x128xf32>
    %c0_2 = arith.constant 0 : index
    %c0_3 = arith.constant 0 : index
    %5 = vector.load %arg3[%c0_2, %c0_3] : memref<128x128xbf16, #tpu.memory_space<vmem>>, vector<128x128xbf16>
    %cst = arith.constant dense<0.000000e+00> : vector<128x128xf32>
    %6 = tpu.matmul %3, %5, %cst {dimension_numbers = #tpu.dot_dimension_numbers<[1], [0], [0], [1], [0, 0, 1, 1], [], []>} : vector<128x128xbf16>, vector<128x128xbf16>, vector<128x128xf32> -> vector<128x128xf32>
    %c0_4 = arith.constant 0 : index
    %c0_5 = arith.constant 0 : index
    %7 = vector.load %arg4[%c0_4, %c0_5] : memref<1x128xf32, #tpu.memory_space<vmem>>, vector<1x128xf32>
    %8 = vector.broadcast %7 : vector<1x128xf32> to vector<128x128xf32>
    %9 = arith.addf %6, %8 : vector<128x128xf32>
    %cst_6 = arith.constant 5.000000e-01 : f32
    %10 = vector.broadcast %cst_6 : f32 to vector<128x128xf32>
    %11 = arith.mulf %10, %9 : vector<128x128xf32>
    %12 = math.tanh %11 : vector<128x128xf32>
    %cst_7 = arith.constant 1.000000e+00 : f32
    %13 = vector.broadcast %cst_7 : f32 to vector<128x128xf32>
    %14 = arith.addf %12, %13 : vector<128x128xf32>
    %cst_8 = arith.constant 5.000000e-01 : f32
    %15 = vector.broadcast %cst_8 : f32 to vector<128x128xf32>
    %16 = arith.mulf %15, %14 : vector<128x128xf32>
    %17 = vector.broadcast %0 : f32 to vector<128x128xf32>
    %18 = arith.mulf %17, %4 : vector<128x128xf32>
    %19 = arith.addf %16, %18 : vector<128x128xf32>
    %20 = arith.truncf %19 : vector<128x128xf32> to vector<128x128xbf16>
    %c0_9 = arith.constant 0 : index
    %c0_10 = arith.constant 0 : index
    %21 = vector.load %arg5[%c0_9, %c0_10] : memref<128x128xbf16, #tpu.memory_space<vmem>>, vector<128x128xbf16>
    %cst_11 = arith.constant dense<0.000000e+00> : vector<128x128xf32>
    %22 = tpu.matmul %20, %21, %cst_11 {dimension_numbers = #tpu.dot_dimension_numbers<[1], [0], [0], [1], [0, 0, 1, 1], [], []>} : vector<128x128xbf16>, vector<128x128xbf16>, vector<128x128xf32> -> vector<128x128xf32>
    %c0_12 = arith.constant 0 : index
    %c0_13 = arith.constant 0 : index
    %23 = vector.load %arg6[%c0_12, %c0_13] : memref<1x128xf32, #tpu.memory_space<vmem>>, vector<1x128xf32>
    %24 = vector.broadcast %23 : vector<1x128xf32> to vector<128x128xf32>
    %25 = arith.addf %22, %24 : vector<128x128xf32>
    %cst_14 = arith.constant 5.000000e-01 : f32
    %26 = vector.broadcast %cst_14 : f32 to vector<128x128xf32>
    %27 = arith.mulf %26, %25 : vector<128x128xf32>
    %28 = math.tanh %27 : vector<128x128xf32>
    %cst_15 = arith.constant 1.000000e+00 : f32
    %29 = vector.broadcast %cst_15 : f32 to vector<128x128xf32>
    %30 = arith.addf %28, %29 : vector<128x128xf32>
    %cst_16 = arith.constant 5.000000e-01 : f32
    %31 = vector.broadcast %cst_16 : f32 to vector<128x128xf32>
    %32 = arith.mulf %31, %30 : vector<128x128xf32>
    %33 = vector.broadcast %1 : f32 to vector<128x128xf32>
    %34 = arith.mulf %33, %4 : vector<128x128xf32>
    %35 = arith.addf %32, %34 : vector<128x128xf32>
    %36 = vector.broadcast %2 : f32 to vector<128x128xf32>
    %37 = arith.mulf %36, %16 : vector<128x128xf32>
    %38 = arith.addf %35, %37 : vector<128x128xf32>
    %39 = arith.truncf %38 : vector<128x128xf32> to vector<128x128xbf16>
    %c0_17 = arith.constant 0 : index
    %c0_18 = arith.constant 0 : index
    %40 = vector.load %arg7[%c0_17, %c0_18] : memref<128x128xbf16, #tpu.memory_space<vmem>>, vector<128x128xbf16>
    %cst_19 = arith.constant dense<0.000000e+00> : vector<128x128xf32>
    %41 = tpu.matmul %39, %40, %cst_19 {dimension_numbers = #tpu.dot_dimension_numbers<[1], [0], [0], [1], [0, 0, 1, 1], [], []>} : vector<128x128xbf16>, vector<128x128xbf16>, vector<128x128xf32> -> vector<128x128xf32>
    %c0_20 = arith.constant 0 : index
    %c0_21 = arith.constant 0 : index
    %42 = vector.load %arg8[%c0_20, %c0_21] : memref<1x128xf32, #tpu.memory_space<vmem>>, vector<1x128xf32>
    %43 = vector.broadcast %42 : vector<1x128xf32> to vector<128x128xf32>
    %44 = arith.addf %41, %43 : vector<128x128xf32>
    %cst_22 = arith.constant 5.000000e-01 : f32
    %45 = vector.broadcast %cst_22 : f32 to vector<128x128xf32>
    %46 = arith.mulf %45, %44 : vector<128x128xf32>
    %47 = math.tanh %46 : vector<128x128xf32>
    %cst_23 = arith.constant 1.000000e+00 : f32
    %48 = vector.broadcast %cst_23 : f32 to vector<128x128xf32>
    %49 = arith.addf %47, %48 : vector<128x128xf32>
    %cst_24 = arith.constant 5.000000e-01 : f32
    %50 = vector.broadcast %cst_24 : f32 to vector<128x128xf32>
    %51 = arith.mulf %50, %49 : vector<128x128xf32>
    %52 = arith.truncf %51 : vector<128x128xf32> to vector<128x128xbf16>
    %c0_25 = arith.constant 0 : index
    %c0_26 = arith.constant 0 : index
    %53 = vector.load %arg9[%c0_25, %c0_26] : memref<128x128xbf16, #tpu.memory_space<vmem>>, vector<128x128xbf16>
    tpu.vector_store %arg9[%c0_25, %c0_26], %52 {strides = array<i32>} : memref<128x128xbf16, #tpu.memory_space<vmem>>, vector<128x128xbf16>,
    return
  }
  func.func @transform_0(%arg0: i32) -> i32 {
    %c0_i32 = arith.constant 0 : i32
    %c0_i32_0 = arith.constant 0 : i32
    return %c0_i32 : i32
  }
  func.func @transform_1(%arg0: i32) -> (i32, i32) {
    %c0_i32 = arith.constant 0 : i32
    %c0_i32_0 = arith.constant 0 : i32
    return %arg0, %c0_i32 : i32, i32
  }
  func.func @transform_2(%arg0: i32) -> (i32, i32) {
    %c0_i32 = arith.constant 0 : i32
    %c0_i32_0 = arith.constant 0 : i32
    %c0_i32_1 = arith.constant 0 : i32
    return %c0_i32, %c0_i32_0 : i32, i32
  }
  func.func @transform_3(%arg0: i32) -> (i32, i32) {
    %c0_i32 = arith.constant 0 : i32
    %c0_i32_0 = arith.constant 0 : i32
    %c0_i32_1 = arith.constant 0 : i32
    return %c0_i32, %c0_i32_0 : i32, i32
  }
  func.func @transform_4(%arg0: i32) -> (i32, i32) {
    %c0_i32 = arith.constant 0 : i32
    %c0_i32_0 = arith.constant 0 : i32
    %c0_i32_1 = arith.constant 0 : i32
    return %c0_i32, %c0_i32_0 : i32, i32
  }
  func.func @transform_5(%arg0: i32) -> (i32, i32) {
    %c0_i32 = arith.constant 0 : i32
    %c0_i32_0 = arith.constant 0 : i32
    %c0_i32_1 = arith.constant 0 : i32
    return %c0_i32, %c0_i32_0 : i32, i32
  }
  func.func @transform_6(%arg0: i32) -> (i32, i32) {
    %c0_i32 = arith.constant 0 : i32
    %c0_i32_0 = arith.constant 0 : i32
    %c0_i32_1 = arith.constant 0 : i32
    return %c0_i32, %c0_i32_0 : i32, i32
  }
  func.func @transform_7(%arg0: i32) -> (i32, i32) {
    %c0_i32 = arith.constant 0 : i32
    %c0_i32_0 = arith.constant 0 : i32
    %c0_i32_1 = arith.constant 0 : i32
    return %c0_i32, %c0_i32_0 : i32, i32
  }
  func.func @transform_8(%arg0: i32) -> (i32, i32) {
    %c0_i32 = arith.constant 0 : i32
    %c0_i32_0 = arith.constant 0 : i32
    return %arg0, %c0_i32 : i32, i32
  }
}

module attributes {stable_mosaic.version = 11 : i64} {
  func.func @_mlp_decoder_kernel(%arg0: i32, %arg1: memref<3xf32, #tpu.memory_space<smem>>, %arg2: memref<128x128xbf16, #tpu.memory_space<vmem>>, %arg3: memref<128x128xbf16, #tpu.memory_space<vmem>>, %arg4: memref<1x128xf32, #tpu.memory_space<vmem>>, %arg5: memref<128x128xbf16, #tpu.memory_space<vmem>>, %arg6: memref<1x128xf32, #tpu.memory_space<vmem>>, %arg7: memref<128x128xbf16, #tpu.memory_space<vmem>>, %arg8: memref<1x128xf32, #tpu.memory_space<vmem>>, %arg9: memref<128x128xbf16, #tpu.memory_space<vmem>>) attributes {dimension_semantics = [#tpu.dimension_semantics<parallel>], iteration_bounds = array<i64: 4>, scalar_prefetch = 0 : i64, scratch_operands = 0 : i64, tpu.core_type = #tpu.core_type<tc>, window_params = [{transform_indices = @transform_0, window_bounds = array<i64: 3>}, {transform_indices = @transform_1, window_bounds = array<i64: 128, 128>}, {pipeline_mode = #tpu.pipeline_mode<synchronous>, transform_indices = @transform_2, window_bounds = array<i64: 128, 128>}, {pipeline_mode = #tpu.pipeline_mode<synchronous>, transform_indices = @transform_3, window_bounds = array<i64: 1, 128>}, {pipeline_mode = #tpu.pipeline_mode<synchronous>, transform_indices = @transform_4, window_bounds = array<i64: 128, 128>}, {pipeline_mode = #tpu.pipeline_mode<synchronous>, transform_indices = @transform_5, window_bounds = array<i64: 1, 128>}, {pipeline_mode = #tpu.pipeline_mode<synchronous>, transform_indices = @transform_6, window_bounds = array<i64: 128, 128>}, {pipeline_mode = #tpu.pipeline_mode<synchronous>, transform_indices = @transform_7, window_bounds = array<i64: 1, 128>}, {transform_indices = @transform_8, window_bounds = array<i64: 128, 128>}]} {
    %c0 = arith.constant 0 : index
    %0 = memref.load %arg1[%c0] : memref<3xf32, #tpu.memory_space<smem>>
    %c1 = arith.constant 1 : index
    %1 = memref.load %arg1[%c1] : memref<3xf32, #tpu.memory_space<smem>>
    %c2 = arith.constant 2 : index
    %2 = memref.load %arg1[%c2] : memref<3xf32, #tpu.memory_space<smem>>
    %c0_0 = arith.constant 0 : index
    %c0_1 = arith.constant 0 : index
    %3 = vector.load %arg2[%c0_0, %c0_1] : memref<128x128xbf16, #tpu.memory_space<vmem>>, vector<128x128xbf16>
    %4 = arith.extf %3 : vector<128x128xbf16> to vector<128x128xf32>
    %c0_2 = arith.constant 0 : index
    %c0_3 = arith.constant 0 : index
    %5 = vector.load %arg3[%c0_2, %c0_3] : memref<128x128xbf16, #tpu.memory_space<vmem>>, vector<128x128xbf16>
    %cst = arith.constant dense<0.000000e+00> : vector<128x128xf32>
    %6 = tpu.matmul %3, %5, %cst {dimension_numbers = #tpu.dot_dimension_numbers<[1], [0], [0], [1], [0, 0, 1, 1], [], []>} : vector<128x128xbf16>, vector<128x128xbf16>, vector<128x128xf32> -> vector<128x128xf32>
    %c0_4 = arith.constant 0 : index
    %c0_5 = arith.constant 0 : index
    %7 = vector.load %arg4[%c0_4, %c0_5] : memref<1x128xf32, #tpu.memory_space<vmem>>, vector<1x128xf32>
    %8 = vector.broadcast %7 : vector<1x128xf32> to vector<128x128xf32>
    %9 = arith.addf %6, %8 : vector<128x128xf32>
    %cst_6 = arith.constant 5.000000e-01 : f32
    %10 = vector.broadcast %cst_6 : f32 to vector<128x128xf32>
    %11 = arith.mulf %10, %9 : vector<128x128xf32>
    %12 = math.tanh %11 : vector<128x128xf32>
    %cst_7 = arith.constant 1.000000e+00 : f32
    %13 = vector.broadcast %cst_7 : f32 to vector<128x128xf32>
    %14 = arith.addf %12, %13 : vector<128x128xf32>
    %cst_8 = arith.constant 5.000000e-01 : f32
    %15 = vector.broadcast %cst_8 : f32 to vector<128x128xf32>
    %16 = arith.mulf %15, %14 : vector<128x128xf32>
    %17 = vector.broadcast %0 : f32 to vector<128x128xf32>
    %18 = arith.mulf %17, %4 : vector<128x128xf32>
    %19 = arith.addf %16, %18 : vector<128x128xf32>
    %20 = arith.truncf %19 : vector<128x128xf32> to vector<128x128xbf16>
    %c0_9 = arith.constant 0 : index
    %c0_10 = arith.constant 0 : index
    %21 = vector.load %arg5[%c0_9, %c0_10] : memref<128x128xbf16, #tpu.memory_space<vmem>>, vector<128x128xbf16>
    %cst_11 = arith.constant dense<0.000000e+00> : vector<128x128xf32>
    %22 = tpu.matmul %20, %21, %cst_11 {dimension_numbers = #tpu.dot_dimension_numbers<[1], [0], [0], [1], [0, 0, 1, 1], [], []>} : vector<128x128xbf16>, vector<128x128xbf16>, vector<128x128xf32> -> vector<128x128xf32>
    %c0_12 = arith.constant 0 : index
    %c0_13 = arith.constant 0 : index
    %23 = vector.load %arg6[%c0_12, %c0_13] : memref<1x128xf32, #tpu.memory_space<vmem>>, vector<1x128xf32>
    %24 = vector.broadcast %23 : vector<1x128xf32> to vector<128x128xf32>
    %25 = arith.addf %22, %24 : vector<128x128xf32>
    %cst_14 = arith.constant 5.000000e-01 : f32
    %26 = vector.broadcast %cst_14 : f32 to vector<128x128xf32>
    %27 = arith.mulf %26, %25 : vector<128x128xf32>
    %28 = math.tanh %27 : vector<128x128xf32>
    %cst_15 = arith.constant 1.000000e+00 : f32
    %29 = vector.broadcast %cst_15 : f32 to vector<128x128xf32>
    %30 = arith.addf %28, %29 : vector<128x128xf32>
    %cst_16 = arith.constant 5.000000e-01 : f32
    %31 = vector.broadcast %cst_16 : f32 to vector<128x128xf32>
    %32 = arith.mulf %31, %30 : vector<128x128xf32>
    %33 = vector.broadcast %1 : f32 to vector<128x128xf32>
    %34 = arith.mulf %33, %4 : vector<128x128xf32>
    %35 = arith.addf %32, %34 : vector<128x128xf32>
    %36 = vector.broadcast %2 : f32 to vector<128x128xf32>
    %37 = arith.mulf %36, %16 : vector<128x128xf32>
    %38 = arith.addf %35, %37 : vector<128x128xf32>
    %39 = arith.truncf %38 : vector<128x128xf32> to vector<128x128xbf16>
    %c0_17 = arith.constant 0 : index
    %c0_18 = arith.constant 0 : index
    %40 = vector.load %arg7[%c0_17, %c0_18] : memref<128x128xbf16, #tpu.memory_space<vmem>>, vector<128x128xbf16>
    %cst_19 = arith.constant dense<0.000000e+00> : vector<128x128xf32>
    %41 = tpu.matmul %39, %40, %cst_19 {dimension_numbers = #tpu.dot_dimension_numbers<[1], [0], [0], [1], [0, 0, 1, 1], [], []>} : vector<128x128xbf16>, vector<128x128xbf16>, vector<128x128xf32> -> vector<128x128xf32>
    %c0_20 = arith.constant 0 : index
    %c0_21 = arith.constant 0 : index
    %42 = vector.load %arg8[%c0_20, %c0_21] : memref<1x128xf32, #tpu.memory_space<vmem>>, vector<1x128xf32>
    %43 = vector.broadcast %42 : vector<1x128xf32> to vector<128x128xf32>
    %44 = arith.addf %41, %43 : vector<128x128xf32>
    %cst_22 = arith.constant 5.000000e-01 : f32
    %45 = vector.broadcast %cst_22 : f32 to vector<128x128xf32>
    %46 = arith.mulf %45, %44 : vector<128x128xf32>
    %47 = math.tanh %46 : vector<128x128xf32>
    %cst_23 = arith.constant 1.000000e+00 : f32
    %48 = vector.broadcast %cst_23 : f32 to vector<128x128xf32>
    %49 = arith.addf %47, %48 : vector<128x128xf32>
    %cst_24 = arith.constant 5.000000e-01 : f32
    %50 = vector.broadcast %cst_24 : f32 to vector<128x128xf32>
    %51 = arith.mulf %50, %49 : vector<128x128xf32>
    %52 = arith.truncf %51 : vector<128x128xf32> to vector<128x128xbf16>
    %c0_25 = arith.constant 0 : index
    %c0_26 = arith.constant 0 : index
    %53 = vector.load %arg9[%c0_25, %c0_26] : memref<128x128xbf16, #tpu.memory_space<vmem>>, vector<128x128xbf16>
    tpu.vector_store %arg9[%c0_25, %c0_26], %52 {strides = array<i32>} : memref<128x128xbf16, #tpu.memory_space<vmem>>, vector<128x128xbf16>,
    return
  }
  func.func @transform_0(%arg0: i32) -> i32 {
    %c0_i32 = arith.constant 0 : i32
    %c0_i32_0 = arith.constant 0 : i32
    return %c0_i32 : i32
  }
  func.func @transform_1(%arg0: i32) -> (i32, i32) {
    %c0_i32 = arith.constant 0 : i32
    %c0_i32_0 = arith.constant 0 : i32
    return %arg0, %c0_i32 : i32, i32
  }
  func.func @transform_2(%arg0: i32) -> (i32, i32) {
    %c0_i32 = arith.constant 0 : i32
    %c0_i32_0 = arith.constant 0 : i32
    %c0_i32_1 = arith.constant 0 : i32
    return %c0_i32, %c0_i32_0 : i32, i32
  }
  func.func @transform_3(%arg0: i32) -> (i32, i32) {
    %c0_i32 = arith.constant 0 : i32
    %c0_i32_0 = arith.constant 0 : i32
    %c0_i32_1 = arith.constant 0 : i32
    return %c0_i32, %c0_i32_0 : i32, i32
  }
  func.func @transform_4(%arg0: i32) -> (i32, i32) {
    %c0_i32 = arith.constant 0 : i32
    %c0_i32_0 = arith.constant 0 : i32
    %c0_i32_1 = arith.constant 0 : i32
    return %c0_i32, %c0_i32_0 : i32, i32
  }
  func.func @transform_5(%arg0: i32) -> (i32, i32) {
    %c0_i32 = arith.constant 0 : i32
    %c0_i32_0 = arith.constant 0 : i32
    %c0_i32_1 = arith.constant 0 : i32
    return %c0_i32, %c0_i32_0 : i32, i32
  }
  func.func @transform_6(%arg0: i32) -> (i32, i32) {
    %c0_i32 = arith.constant 0 : i32
    %c0_i32_0 = arith.constant 0 : i32
    %c0_i32_1 = arith.constant 0 : i32
    return %c0_i32, %c0_i32_0 : i32, i32
  }
  func.func @transform_7(%arg0: i32) -> (i32, i32) {
    %c0_i32 = arith.constant 0 : i32
    %c0_i32_0 = arith.constant 0 : i32
    %c0_i32_1 = arith.constant 0 : i32
    return %c0_i32, %c0_i32_0 : i32, i32
  }
  func.func @transform_8(%arg0: i32) -> (i32, i32) {
    %c0_i32 = arith.constant 0 : i32
    %c0_i32_0 = arith.constant 0 : i32
    return %arg0, %c0_i32 : i32, i32
  }
}

</mosaic_0001>

<bundles_post_ra>
// kernel: _mlp_decoder_call.1
= control target key start
LH: loop header
LB: loop body
LE: loop exit
PB: predicated region body
PF: predicated region fallthrough
CT: control target
= control target key end

     0   :  { %13 = vsyncpa [#allocation4], 0  ;;  %s2776_s0 = inlined_call_operand.vmem [shape: f32[3], index: 0, kind: input, shape index: {}]   ;;  %s2777_s1 = inlined_call_operand.hbm [shape: bf16[512,128], index: 1, kind: input, shape index: {}]   ;;  %s2778_s2 = inlined_call_operand.hbm [shape: bf16[128,128], index: 2, kind: input, shape index: {}]   ;;  %s2779_s3 = inlined_call_operand.vmem [shape: f32[1,128], index: 3, kind: input, shape index: {}]   ;;  %s2780_s4 = inlined_call_operand.hbm [shape: bf16[128,128], index: 4, kind: input, shape index: {}]   ;;  %s2781_s5 = inlined_call_operand.vmem [shape: f32[1,128], index: 5, kind: input, shape index: {}]   ;;  %s2782_s6 = inlined_call_operand.hbm [shape: bf16[128,128], index: 6, kind: input, shape index: {}]   ;;  %s2783_s7 = inlined_call_operand.vmem [shape: f32[1,128], index: 7, kind: input, shape index: {}]   ;;  %s2784_s8 = inlined_call_operand.vmem [shape: bf16[512,128], index: 8, kind: output, shape index: {}]  }
   0x1   :  { %14 = vsyncpa [#allocation3], 0 }
   0x2   :  { %16 = vsyncpa [#allocation3 + $0x1], 0 }
   0x3   :  { %17 = vsyncpa [#allocation7], 0 }
   0x4   :  { %18 = vsyncpa [#allocation10], 0  ;;  %s2214_s27 = smov 0   ;;  %s2216_s28 = smov 0  }
   0x5   :  { %s2218_s29 = smov 0   ;;  %s2220_s30 = smov 0  }
   0x6 LB: > { %s2789_s9 = sadd.s32 4294967295, %s2160_s30   ;;  %p65_p0 = scmp.ne.s32.totalorder %s2152_s28, %s2148_s27  ;;  %s2160_s30 = sphi %s2220_s30, %s2804_s30   ;;  %s2156_s29 = sphi %s2218_s29, %s2803_s29   ;;  %s2152_s28 = sphi %s2216_s28, %s2802_s28   ;;  %s2148_s27 = sphi %s2214_s27, %s2801_s27  }
   0x7   : > { %p2236_p1 = scmp.eq.s32.totalorder %s2789_s9, 0  ;;  %p1471_p2 = scmp.ge.s32.totalorder %s2160_s30, 1 }
   0x8   : > { %p228_p3 = scmp.lt.s32.totalorder %s2160_s30, 5  ;;  %s2162_s13 = smov [#allocation6]  }
   0x9   : > { %s2790_s10 = scalar_select %p2236_p1, 1, 0 }
   0xa   : > { %p2244_p4 = por %p2236_p1, %p65_p0  ;;  %p2248_p5 = pnand %p1471_p2, %p228_p3 }
   0xb   : > { %s251_s14 = sshll.u32 %s2162_s13, 4  ;;  %s241_s17 = sshll.u32 %s2776_s0, 4  ;;  %s2252_s14 = int_to_ptr.vmem [resolvable:$true] %s251_s14  ;;  %s2265_s17 = int_to_ptr.vmem [resolvable:$true] %s241_s17 }
   0xc   : > { %s2791_s11 = scalar_select %p2244_p4, 1, 0 }
   0xd   : > { %s2792_s12 = scalar_select %p2248_p5, 1, 0 }
   0xe   : > { %p1785_p6 = pneg %p2248_p5  ;;  %s2163_s19 = smov [#allocation8]  }
   0xf   : > { %s2267_s20 = sshll.u32 %s2163_s19, 4  ;;  %s1985_s23 = scalar_lea.hbm %s2778_s2, 1024  ;;  %s268_s20 = int_to_ptr.vmem [resolvable:$true] %s2267_s20 }
  0x10   : > { %p2261_p7 = pnand %p1785_p6, %p2236_p1  ;;  %p1986_p8 = scmp.ne.s32.totalorder %s2778_s2, %s1985_s23 }
  0x11   : > { %p1992_p12 = scmp.lt.u32.totalorder %s1985_s23, %s2778_s2 }
  0x12   : > { %p2277_p9 = pneg %p2261_p7 }
  0x14   : > { %p1988_p10 = pnand %p2277_p9, %p1986_p8 }
  0x16   : > { %p1989_p11 = pneg %p1988_p10 }
  0x18   : > { %p1994_p13 = pnand %p1992_p12, %p1989_p11 }
  0x1a   : > { %1997 = shalt.err (!%p1994_p13)
}
  0x1b   : > { %s1998_s15 = scalar_lea.vmem %s2252_s14, 1024  ;;  %p2006_p6 = scmp.lt.s32.totalorder %s2252_s14, %s2252_s14 }
  0x1c   : > { %p1999_p0 = scmp.ne.s32.totalorder %s2252_s14, %s1998_s15  ;;  %p2007_p4 = scmp.lt.s32.totalorder %s1998_s15, %s1998_s15 }
  0x1e   : > { %p2001_p2 = pnand %p1999_p0, %p2277_p9  ;;  %p2008_p8 = por %p2007_p4, %p2006_p6 }
  0x20   : > { %p2002_p3 = pneg %p2001_p2 }
  0x22   : > { %p2009_p10 = pnand %p2008_p8, %p2002_p3 }
  0x24   : > { %2012 = shalt.err (!%p2009_p10)
}
  0x25   : > { %s2164_s16 = smov 64   ;;  %s2165_s19 = smov 4  }
  0x26   : > { %1791 = dma.hbm_to_vmem [thread:$0]  (!%p2261_p7), %s2778_s2, 1024, %s2252_s14, [#allocation7], %s2164_s16, %s2164_s16, %s2165_s19  }
  0x27   : > { %s2013_s23 = scalar_lea.vmem %s2265_s17, 16  ;;  %p2021_p13 = scmp.lt.s32.totalorder %s2265_s17, %s2265_s17 }
  0x28   : > { %p2014_p4 = scmp.ne.s32.totalorder %s2265_s17, %s2013_s23  ;;  %p2022_p0 = scmp.lt.s32.totalorder %s2013_s23, %s2013_s23 }
  0x2a   : > { %p2016_p11 = pnand %p2014_p4, %p2277_p9  ;;  %p2023_p2 = por %p2022_p0, %p2021_p13 }
  0x2c   : > { %p2017_p12 = pneg %p2016_p11 }
  0x2e   : > { %p2024_p3 = pnand %p2023_p2, %p2017_p12 }
  0x30   : > { %2027 = shalt.err (!%p2024_p3)
}
  0x31   : > { %s2166_s24 = smov [#allocation2]   ;;  %s2028_s27 = scalar_lea.hbm %s2780_s4, 1024 }
  0x32   : > { %1788 = dma.vmem_to_smem (!%p2261_p7), %s2265_s17, 16, %s2166_s24, [#allocation4]  }
  0x33   : > { %p2029_p6 = scmp.ne.s32.totalorder %s2780_s4, %s2028_s27  ;;  %p2035_p4 = scmp.lt.u32.totalorder %s2028_s27, %s2780_s4 }
  0x35   : > { %p2031_p8 = pnand %p2029_p6, %p2277_p9 }
  0x37   : > { %p2032_p10 = pneg %p2031_p8 }
  0x39   : > { %p2037_p11 = pnand %p2035_p4, %p2032_p10 }
  0x3b   : > { %2040 = shalt.err (!%p2037_p11)
}
  0x3c   : > { %s2041_s23 = scalar_lea.vmem %s268_s20, 1024  ;;  %p2049_p2 = scmp.lt.s32.totalorder %s268_s20, %s268_s20 }
  0x3d   : > { %p2042_p12 = scmp.ne.s32.totalorder %s268_s20, %s2041_s23  ;;  %p2050_p3 = scmp.lt.s32.totalorder %s2041_s23, %s2041_s23 }
  0x3f   : > { %p2044_p13 = pnand %p2042_p12, %p2277_p9  ;;  %p2051_p1 = por %p2050_p3, %p2049_p2 }
  0x41   : > { %p2045_p0 = pneg %p2044_p13 }
  0x43   : > { %p2052_p5 = pnand %p2051_p1, %p2045_p0 }
  0x45   : > { %2055 = shalt.err (!%p2052_p5)
}
  0x46   : > { %1794 = dma.hbm_to_vmem [thread:$0]  (!%p2261_p7), %s2780_s4, 1024, %s268_s20, [#allocation7], %s2164_s16, %s2164_s16, %s2165_s19  }
  0x47   : > { %s2167_s14 = smov [#allocation9]   ;;  %s2056_s15 = scalar_lea.hbm %s2782_s6, 1024 }
  0x48   : > { %s283_s25 = sshll.u32 %s2167_s14, 4  ;;  %p2057_p1 = scmp.ne.s32.totalorder %s2782_s6, %s2056_s15  ;;  %s284_s25 = int_to_ptr.vmem [resolvable:$true] %s283_s25 }
  0x49   : > { %p2063_p8 = scmp.lt.u32.totalorder %s2056_s15, %s2782_s6 }
  0x4a   : > { %p2059_p5 = pnand %p2057_p1, %p2277_p9 }
  0x4c   : > { %p2060_p6 = pneg %p2059_p5 }
  0x4e   : > { %p2065_p10 = pnand %p2063_p8, %p2060_p6 }
  0x50   : > { %2068 = shalt.err (!%p2065_p10)
}
  0x51   : > { %s2069_s20 = scalar_lea.vmem %s284_s25, 1024  ;;  %p2077_p13 = scmp.lt.s32.totalorder %s284_s25, %s284_s25 }
  0x52   : > { %p2070_p4 = scmp.ne.s32.totalorder %s284_s25, %s2069_s20  ;;  %p2078_p0 = scmp.lt.s32.totalorder %s2069_s20, %s2069_s20 }
  0x54   : > { %p2072_p11 = pnand %p2070_p4, %p2277_p9  ;;  %p2079_p2 = por %p2078_p0, %p2077_p13 }
  0x56   : > { %p2073_p12 = pneg %p2072_p11 }
  0x58   : > { %p2080_p3 = pnand %p2079_p2, %p2073_p12 }
  0x5a   : > { %2083 = shalt.err (!%p2080_p3)
}
  0x5b   : > { %1797 = dma.hbm_to_vmem [thread:$0]  (!%p2261_p7), %s2782_s6, 1024, %s284_s25, [#allocation10], %s2164_s16, %s2164_s16, %s2165_s19  }
  0x5c   : > { %s2354_s26 = sadd.s32 1, %s2160_s30   ;;  %s52_s18 = sadd.s32 1, %s2156_s29 }
  0x5d   : > { %s49_s24 = ssub.s32 %s2160_s30, %s2354_s26  ;;  %p59_p9 = scmp.ne.s32.totalorder %s2156_s29, %s2152_s28 }
  0x5e   : > { %p50_p1 = scmp.eq.s32.totalorder %s49_s24, 0  ;;  %p60_p5 = scmp.eq.s32.totalorder %s2160_s30, 0 }
  0x5f   : > { %p1806_p6 = scmp.lt.s32.totalorder %s2160_s30, 4  ;;  %s300_s14 = sand.u32 1, %s2156_s29  }
  0x60   : > { %s2365_s27 = scalar_select %p50_p1, %s2156_s29, %s52_s18  }
  0x61   : > { %p61_p8 = por %p60_p5, %p59_p9  ;;  %s1477_s13 = sshll.u32 %s300_s14, 6 }
  0x62   : > { %s1543_s15 = sshll.u32 %s2160_s30, 10  ;;  %s304_s25 = scalar_lea.vmem [#allocation5], %s1477_s13 }
  0x63   : > { %s2371_s23 = scalar_lea.hbm %s2777_s1, %s1543_s15  ;;  %s311_s20 = sshll.u32 %s304_s25, 4  ;;  %s2377_s20 = int_to_ptr.vmem [resolvable:$true] %s311_s20 }
  0x64   : > { %p2373_p7 = pnand %p1806_p6, %p61_p8  ;;  %s2379_s17 = scalar_lea.sflag [#allocation3], %s300_s14 }
  0x65   : > { %s2084_s18 = scalar_lea.hbm %s2371_s23, 1024  ;;  %s2089_s15 = scalar_lea.hbm %s2777_s1, 4096 }
  0x66   : > { %p2085_p10 = scmp.ne.s32.totalorder %s2371_s23, %s2084_s18  ;;  %p2086_p4 = pneg %p2373_p7 }
  0x67   : > { %p2090_p13 = scmp.lt.u32.totalorder %s2371_s23, %s2777_s1  ;;  %p2091_p0 = scmp.lt.u32.totalorder %s2089_s15, %s2084_s18 }
  0x68   : > { %p2087_p11 = pnand %p2086_p4, %p2085_p10  ;;  %p2093_p3 = scmp.lt.u32.totalorder %s2084_s18, %s2371_s23 }
  0x69   : > { %p2092_p2 = por %p2091_p0, %p2090_p13 }
  0x6a   : > { %p2088_p12 = pneg %p2087_p11 }
  0x6b   : > { %p2094_p9 = por %p2093_p3, %p2092_p2 }
  0x6d   : > { %p2095_p1 = pnand %p2094_p9, %p2088_p12 }
  0x6f   : > { %2098 = shalt.err (!%p2095_p1)
}
  0x70   : > { %s2099_s14 = scalar_lea.vmem %s2377_s20, 1024  ;;  %s2168_s25 = smov [#allocation5]  }
  0x71   : > { %p2100_p5 = scmp.ne.s32.totalorder %s2377_s20, %s2099_s14  ;;  %s2104_s24 = sshll.u32 %s2168_s25, 4  ;;  %s2105_s24 = int_to_ptr.vmem [resolvable:$false] %s2104_s24 }
  0x72   : > { %s2106_s13 = scalar_lea.vmem %s2105_s24, 2048  ;;  %p2107_p10 = scmp.lt.s32.totalorder %s2377_s20, %s2105_s24 }
  0x73   : > { %p2102_p6 = pnand %p2100_p5, %p2086_p4  ;;  %p2108_p11 = scmp.lt.s32.totalorder %s2106_s13, %s2099_s14 }
  0x75   : > { %p2103_p8 = pneg %p2102_p6  ;;  %p2109_p13 = por %p2108_p11, %p2107_p10 }
  0x77   : > { %p2110_p0 = pnand %p2109_p13, %p2103_p8 }
  0x79   : > { %2113 = shalt.err (!%p2110_p0)
}
  0x7a   : > { %1801 = dma.hbm_to_vmem [thread:$0]  (!%p2373_p7), %s2371_s23, 1024, %s2377_s20, %s2379_s17, %s2164_s16, %s2164_s16, %s2165_s19  }
  0x7b   : > { %p2796_p4 = scmp.ne.s32.totalorder %s2792_s12, 0 }
  0x7c   : > { %p2797_p12 = scmp.ne.s32.totalorder (!%p2796_p4), %s2790_s10, 0 }
  0x7d   : > { %323 = sbr.rel (%p2796_p4) target bundleno = 917 (0x395), region = 52 }
  0x84   : > { %2131 = dma.done.wait (%p2797_p12), [#allocation4], 16  }
  0x85   : > { %2133 = vsyncadd (%p2797_p12), [#allocation4], 4294967280  ;;  %s329_s18 = sand.u32 1, %s2152_s28   ;;  %p2798_p2 = scmp.ne.s32.totalorder %s2791_s11, 0 }
  0x86   : > { %s1482_s9 = sshll.u32 %s329_s18, 6  ;;  %s330_s15 = scalar_lea.sflag [#allocation3], %s329_s18 }
  0x87   : > { %s2417_s21 = scalar_lea.vmem [#allocation5], %s1482_s9 }
  0x88   : > { %2135 = dma.done.wait (%p2798_p2), %s330_s15, 1024  }
  0x89   : > { %2137 = vsyncadd (%p2798_p2), %s330_s15, 4294966272 }
  0x8a   : > { %2139 = dma.done.wait (%p2797_p12), [#allocation7], 2048  }
  0x8b   : > { %2141 = vsyncadd (%p2797_p12), [#allocation7], 4294965248 }
  0x8c   : > { %2143 = dma.done.wait (%p2797_p12), [#allocation10], 1024  }
  0x8d   : > { %2145 = vsyncadd (%p2797_p12), [#allocation10], 4294966272 }
  0x8e   : > { %350 = sfence }
  0x8f   : > { %v1849_v0 = vld [vmem:[#allocation6] sm:$0xff]   ;;  %v1850_v1 = vld [vmem:[#allocation6 + $0x8] sm:$0xff]   ;;  %v1851_v2 = vld [vmem:[#allocation6 + $0x10] sm:$0xff]   ;;  %s387_s12 = sld [smem:[#allocation2]]  ;;  %s1488_s23 = sld [smem:[#allocation2 + $0x1]] }
  0x90   : > { %1655 = vmatprep.subr.bf16.mxu0 %v1849_v0  ;;  %v1852_v3 = vld [vmem:[#allocation6 + $0x18] sm:$0xff]   ;;  %v2432_v4 = vld [vmem:[%s2417_s21] sm:$0xff]   ;;  %v1854_v7 = vld [vmem:[#allocation6 + $0x28] sm:$0xff]   ;;  %s1489_s20 = sld [smem:[#allocation2 + $0x2]]  ;;  %s2799_s14 = sadd.s32 4294967295, %s2160_s30  }
  0x91   : > { %1656 = vmatpush3.bf16.msra.mxu0 %v1849_v0  ;;  %v1853_v5 = vld [vmem:[#allocation6 + $0x20] sm:$0xff]   ;;  %1671 = vmatprep.mubr.bf16.mxu0 %v2432_v4  ;;  %v1855_v8 = vld [vmem:[#allocation6 + $0x30] sm:$0xff]   ;;  %v1856_v9 = vld [vmem:[#allocation6 + $0x38] sm:$0xff]   ;;  %v406_v46 = vunpack.c.l.bf16 %v2432_v4  ;;  %v407_v49 = vunpack.c.h.bf16 %v2432_v4  ;;  %s1486_s25 = sshll.u32 %s2799_s14, 4 }
  0x92   : > { %1657 = vmatprep.subr.bf16.mxu0 %v1850_v1  ;;  %v1865_v6 = vld [vmem:[#allocation8] sm:$0xff]   ;;  %v2436_v10 = vld [vmem:[%s2417_s21 + $0x8] sm:$0xff]   ;;  %v2439_v11 = vld [vmem:[%s2417_s21 + $0x10] sm:$0xff]   ;;  %p381_p7 = scmp.lt.s32.totalorder %s1486_s25, 63 }
  0x93   : > { %1687 = vmatprep.subr.bf16.mxu1 %v1865_v6  ;;  %v2444_v12 = vld [vmem:[%s2417_s21 + $0x18] sm:$0xff]   ;;  %v2447_v13 = vld [vmem:[%s2417_s21 + $0x20] sm:$0xff]   ;;  %v2452_v14 = vld [vmem:[%s2417_s21 + $0x28] sm:$0xff]   ;;  %v408_v50 = vunpack.c.l.bf16 %v2436_v10  ;;  %v409_v52 = vunpack.c.h.bf16 %v2436_v10  ;;  %v410_v57 = vunpack.c.l.bf16 %v2439_v11 }
  0x94   : > { %1688 = vmatpush3.bf16.msra.mxu1 %v1865_v6  ;;  %v2455_v15 = vld [vmem:[%s2417_s21 + $0x30] sm:$0xff]   ;;  %v2460_v16 = vld [vmem:[%s2417_s21 + $0x38] sm:$0xff]   ;;  %v1866_v17 = vld [vmem:[#allocation8 + $0x8] sm:$0xff]   ;;  %v412_v58 = vunpack.c.l.bf16 %v2444_v12  ;;  %s2806_s25 = smov (!%p381_p7, %s1486_s25), 63 }
  0x95   : > { %1658 = vmatpush3.bf16.msra.mxu0 %v1850_v1  ;;  %1689 = vmatprep.subr.bf16.mxu1 %v1866_v17  ;;  %v1867_v18 = vld [vmem:[#allocation8 + $0x10] sm:$0xff]   ;;  %v1868_v19 = vld [vmem:[#allocation8 + $0x18] sm:$0xff]   ;;  %v1869_v20 = vld [vmem:[#allocation8 + $0x20] sm:$0xff]   ;;  %v2485_v54 = vstv %s387_s12  ;;  %s1487_s30 = sshll.u32 %s2806_s25, 2 }
  0x96   : > { %1659 = vmatprep.subr.bf16.mxu0 %v1851_v2  ;;  %v1870_v21 = vld [vmem:[#allocation8 + $0x28] sm:$0xff]   ;;  %v1871_v22 = vld [vmem:[#allocation8 + $0x30] sm:$0xff]   ;;  %v1872_v23 = vld [vmem:[#allocation8 + $0x38] sm:$0xff]   ;;  %v703_v1 = vmul.f32 %v2485_v54, %v406_v46  ;;  %s2749_s18 = scalar_lea.vmem %s2784_s8, %s1487_s30 }
  0x97   : > { %v2463_v24 = vld [vmem:[#allocation9] sm:$0xff]  }
  0x98   : > { %1690 = vmatpush3.bf16.msra.mxu1 %v1866_v17  ;;  %v2471_v25 = vld [vmem:[%s2779_s3] ss:$0 sm:$0xff] }
  0x99   : > { %1660 = vmatpush3.bf16.msra.mxu0 %v1851_v2  ;;  %1691 = vmatprep.subr.bf16.mxu1 %v1867_v18  ;;  %v705_v2 = vmul.f32 %v2485_v54, %v408_v50 }
  0x9a   : > { %1661 = vmatprep.subr.bf16.mxu0 %v1852_v3 }
  0x9c   : > { %1692 = vmatpush3.bf16.msra.mxu1 %v1867_v18 }
  0x9d   : > { %1662 = vmatpush3.bf16.msra.mxu0 %v1852_v3  ;;  %1693 = vmatprep.subr.bf16.mxu1 %v1868_v19 }
  0x9e   : > { %1663 = vmatprep.subr.bf16.mxu0 %v1853_v5 }
  0xa0   : > { %1694 = vmatpush3.bf16.msra.mxu1 %v1868_v19 }
  0xa1   : > { %1664 = vmatpush3.bf16.msra.mxu0 %v1853_v5  ;;  %1695 = vmatprep.subr.bf16.mxu1 %v1869_v20 }
  0xa2   : > { %1665 = vmatprep.subr.bf16.mxu0 %v1854_v7 }
  0xa4   : > { %1696 = vmatpush3.bf16.msra.mxu1 %v1869_v20 }
  0xa5   : > { %1666 = vmatpush3.bf16.msra.mxu0 %v1854_v7  ;;  %1697 = vmatprep.subr.bf16.mxu1 %v1870_v21 }
  0xa6   : > { %1667 = vmatprep.subr.bf16.mxu0 %v1855_v8 }
  0xa8   : > { %1698 = vmatpush3.bf16.msra.mxu1 %v1870_v21 }
  0xa9   : > { %1668 = vmatpush3.bf16.msra.mxu0 %v1855_v8  ;;  %1699 = vmatprep.subr.bf16.mxu1 %v1871_v22  ;;  %v704_v8 = vmul.f32 %v2485_v54, %v407_v49 }
  0xaa   : > { %1669 = vmatprep.subr.bf16.mxu0 %v1856_v9 }
  0xac   : > { %1700 = vmatpush3.bf16.msra.mxu1 %v1871_v22 }
  0xad   : > { %1670 = vmatpush3.bf16.msra.mxu0 %v1856_v9  ;;  %1701 = vmatprep.subr.bf16.mxu1 %v1872_v23  ;;  %v706_v9 = vmul.f32 %v2485_v54, %v409_v52 }
  0xae   : > { %1719 = vmatprep.subr.bf16.mxu0 %v2463_v24 }
  0xb0   : > { %1672 = vmatmul.mubr.bf16.vlgmr.msra.gmra.mrb[0].mxu0 %v2436_v10  ;;  %1702 = vmatpush3.bf16.msra.mxu1 %v1872_v23 }
  0xb1   : > { %1675 = vmatprep.mubr.bf16.mxu0 %v2439_v11  ;;  %1751 = vmatprep.subr.bf16.mxu1 %v2463_v24 }
  0xb2   : > { %1720 = vmatpush3.bf16.msra.mxu0 %v2463_v24 }
  0xb8   : > { %1676 = vmatmul.mubr.bf16.gmra.mrb[4].mxu0 %v2444_v12 }
  0xb9   : > { %1679 = vmatprep.mubr.bf16.mxu0 %v2447_v13 }
  0xc0   : > { %1680 = vmatmul.mubr.bf16.gmra.mrb[8].mxu0 %v2452_v14 }
  0xc1   : > { %1683 = vmatprep.mubr.bf16.mxu0 %v2455_v15 }
  0xc8   : > { %1684 = vmatmul.mubr.bf16.gmra.mrb[12].mxu0 %v2460_v16 }
 0x183   : > { %v1673_v26 = vpop.f32.mrb[0].mxu0 }
 0x184   : > { %v584_v27 = vadd.f32 %v1673_v26, %v2471_v25  ;;  %v575_v28 = vpop.f32.mrb[1].mxu0 }
 0x185   : > { %v576_v29 = vadd.f32 %v2471_v25, %v575_v28  ;;  %v1674_v30 = vpop.f32.mrb[2].mxu0  ;;  %v413_v28 = vunpack.c.h.bf16 %v2444_v12 }
 0x186   : > { %v640_v31 = vmul.f32 0.5, %v584_v27  ;;  %v587_v32 = vadd.f32 %v1674_v30, %v2471_v25  ;;  %v578_v33 = vpop.f32.mrb[3].mxu0 }
 0x187   : > { %v638_v34 = vmul.f32 0.5, %v576_v29  ;;  %v579_v35 = vadd.f32 %v2471_v25, %v578_v33  ;;  %v709_v33 = vmul.f32 %v2485_v54, %v412_v58 }
 0x188   : > { %1889 = vtanh.f32 %v640_v31  ;;  %v641_v36 = vmul.f32 0.5, %v587_v32  ;;  %v411_v31 = vunpack.c.h.bf16 %v2439_v11 }
 0x189   : > { %1891 = vtanh.f32 %v638_v34  ;;  %v639_v37 = vmul.f32 0.5, %v579_v35 }
 0x18a   : > { %1893 = vtanh.f32 %v641_v36 }
 0x18b   : > { %1895 = vtanh.f32 %v639_v37  ;;  %v1677_v38 = vpop.f32.mrb[4].mxu0  ;;  %v707_v37 = vmul.f32 %v2485_v54, %v410_v57 }
 0x18c   : > { %v600_v39 = vadd.f32 %v1677_v38, %v2471_v25  ;;  %v591_v40 = vpop.f32.mrb[5].mxu0 }
 0x18d   : > { %v592_v41 = vadd.f32 %v2471_v25, %v591_v40  ;;  %v1678_v42 = vpop.f32.mrb[6].mxu0 }
 0x18e   : > { %v644_v43 = vmul.f32 0.5, %v600_v39  ;;  %v603_v44 = vadd.f32 %v1678_v42, %v2471_v25  ;;  %v594_v45 = vpop.f32.mrb[7].mxu0 }
 0x18f   : > { %v642_v47 = vmul.f32 0.5, %v592_v41  ;;  %v595_v48 = vadd.f32 %v2471_v25, %v594_v45 }
 0x190   : > { %1897 = vtanh.f32 %v644_v43  ;;  %v645_v51 = vmul.f32 0.5, %v603_v44 }
 0x191   : > { %1899 = vtanh.f32 %v642_v47  ;;  %v643_v53 = vmul.f32 0.5, %v595_v48 }
 0x192   : > { %v1890_v55 = vpop.eup %1889  ;;  %1901 = vtanh.f32 %v645_v51  ;;  %v710_v51 = vmul.f32 %v2485_v54, %v413_v28 }
 0x193   : > { %v1892_v56 = vpop.eup %1891  ;;  %v672_v59 = vadd.f32 1.0, %v1890_v55  ;;  %1903 = vtanh.f32 %v643_v53  ;;  %v1681_v60 = vpop.f32.mrb[8].mxu0 }
 0x194   : > { %v1894_v61 = vpop.eup %1893  ;;  %v670_v62 = vadd.f32 1.0, %v1892_v56  ;;  %v616_v63 = vadd.f32 %v1681_v60, %v2471_v25  ;;  %v607_v0 = vpop.f32.mrb[9].mxu0 }
 0x195   : > { %v1896_v3 = vpop.eup %1895  ;;  %v673_v5 = vadd.f32 1.0, %v1894_v61  ;;  %v608_v6 = vadd.f32 %v2471_v25, %v607_v0  ;;  %v1682_v7 = vpop.f32.mrb[10].mxu0  ;;  %v2506_v22 = vmul.f32 0.5, %v672_v59  ;;  %v708_v61 = vmul.f32 %v2485_v54, %v411_v31 }
 0x196   : > { %v671_v17 = vadd.f32 1.0, %v1896_v3  ;;  %v648_v18 = vmul.f32 0.5, %v616_v63  ;;  %v619_v19 = vadd.f32 %v1682_v7, %v2471_v25  ;;  %v610_v20 = vpop.f32.mrb[11].mxu0  ;;  %v2504_v21 = vmul.f32 0.5, %v670_v62 }
 0x197   : > { %v2508_v23 = vmul.f32 0.5, %v673_v5  ;;  %v646_v26 = vmul.f32 0.5, %v608_v6  ;;  %v611_v27 = vadd.f32 %v2471_v25, %v610_v20  ;;  %v721_v41 = vadd.f32 %v705_v2, %v2506_v22 }
 0x198   : > { %1905 = vtanh.f32 %v648_v18  ;;  %v649_v29 = vmul.f32 0.5, %v619_v19  ;;  %v2512_v30 = vmul.f32 0.5, %v671_v17  ;;  %v719_v35 = vadd.f32 %v703_v1, %v2504_v21 }
 0x199   : > { %1907 = vtanh.f32 %v646_v26  ;;  %v647_v32 = vmul.f32 0.5, %v611_v27  ;;  %v722_v42 = vadd.f32 %v706_v9, %v2508_v23  ;;  %v414_v18 = vunpack.c.l.bf16 %v2447_v13 }
 0x19a   : > { %v1898_v34 = vpop.eup %1897  ;;  %1909 = vtanh.f32 %v649_v29  ;;  %v720_v36 = vadd.f32 %v704_v8, %v2512_v30  ;;  %v416_v8 = vunpack.c.l.bf16 %v2452_v14  ;;  %v417_v19 = vunpack.c.h.bf16 %v2452_v14 }
 0x19b   : > { %v1900_v38 = vpop.eup %1899  ;;  %v676_v39 = vadd.f32 1.0, %v1898_v34  ;;  %1911 = vtanh.f32 %v647_v32  ;;  %v1685_v40 = vpop.f32.mrb[12].mxu0  ;;  %v736_v60 = vpack.c.bf16 %v722_v42, %v721_v41  ;;  %v415_v27 = vunpack.c.h.bf16 %v2447_v13 }
 0x19c   : > { %v1902_v43 = vpop.eup %1901  ;;  %v674_v44 = vadd.f32 1.0, %v1900_v38  ;;  %v632_v45 = vadd.f32 %v1685_v40, %v2471_v25  ;;  %v623_v47 = vpop.f32.mrb[13].mxu0  ;;  %v735_v48 = vpack.c.bf16 %v720_v36, %v719_v35  ;;  %v713_v40 = vmul.f32 %v2485_v54, %v416_v8 }
 0x19d   : > { %v1904_v53 = vpop.eup %1903  ;;  %v677_v55 = vadd.f32 1.0, %v1902_v43  ;;  %v624_v56 = vadd.f32 %v2471_v25, %v623_v47  ;;  %v1686_v59 = vpop.f32.mrb[14].mxu0  ;;  %v2536_v3 = vmul.f32 0.5, %v676_v39  ;;  %v711_v47 = vmul.f32 %v2485_v54, %v414_v18 }
 0x19e   : > { %v2533_v62 = vmul.f32 0.5, %v674_v44  ;;  %v675_v63 = vadd.f32 1.0, %v1904_v53  ;;  %v652_v0 = vmul.f32 0.5, %v632_v45  ;;  %v635_v1 = vadd.f32 %v1686_v59, %v2471_v25  ;;  %v626_v2 = vpop.f32.mrb[15].mxu0  ;;  %1703 = vmatprep.mubr.bf16.mxu1 %v735_v48 }
 0x19f   : > { %v2538_v5 = vmul.f32 0.5, %v677_v55  ;;  %v650_v6 = vmul.f32 0.5, %v624_v56  ;;  %v627_v7 = vadd.f32 %v2471_v25, %v626_v2  ;;  %1704 = vmatmul.mubr.bf16.vlgmr.msra.gmra.mrb[0].mxu1 %v736_v60  ;;  %v725_v35 = vadd.f32 %v709_v33, %v2536_v3 }
 0x1a0   : > { %v2542_v9 = vmul.f32 0.5, %v675_v63  ;;  %1913 = vtanh.f32 %v652_v0  ;;  %v653_v17 = vmul.f32 0.5, %v635_v1  ;;  %1759 = vmatpush3.bf16.msra.mxu1 %v2463_v24  ;;  %v723_v25 = vadd.f32 %v707_v37, %v2533_v62 }
 0x1a1   : > { %1915 = vtanh.f32 %v650_v6  ;;  %v651_v20 = vmul.f32 0.5, %v627_v7  ;;  %v726_v24 = vadd.f32 %v710_v51, %v2538_v5  ;;  %v714_v44 = vmul.f32 %v2485_v54, %v417_v19 }
 0x1a2   : > { %v1906_v26 = vpop.eup %1905  ;;  %1917 = vtanh.f32 %v653_v17  ;;  %v724_v29 = vadd.f32 %v708_v61, %v2542_v9  ;;  %v712_v48 = vmul.f32 %v2485_v54, %v415_v27  ;;  %v420_v55 = vunpack.c.l.bf16 %v2460_v16 }
 0x1a3   : > { %v1908_v32 = vpop.eup %1907  ;;  %v680_v34 = vadd.f32 1.0, %v1906_v26  ;;  %1919 = vtanh.f32 %v651_v20  ;;  %v738_v43 = vpack.c.bf16 %v726_v24, %v725_v35  ;;  %v421_v56 = vunpack.c.h.bf16 %v2460_v16 }
 0x1a4   : > { %v1910_v36 = vpop.eup %1909  ;;  %v678_v38 = vadd.f32 1.0, %v1908_v32  ;;  %v737_v39 = vpack.c.bf16 %v724_v29, %v723_v25  ;;  %v418_v63 = vunpack.c.l.bf16 %v2455_v15  ;;  %v419_v0 = vunpack.c.h.bf16 %v2455_v15 }
 0x1a5   : > { %v1912_v41 = vpop.eup %1911  ;;  %v2555_v42 = vmul.f32 0.5, %v680_v34  ;;  %v681_v37 = vadd.f32 1.0, %v1910_v36  ;;  %v717_v35 = vmul.f32 %v2485_v54, %v420_v55  ;;  %v718_v24 = vmul.f32 %v2485_v54, %v421_v56 }
 0x1a6   : > { %v2560_v45 = vmul.f32 0.5, %v678_v38  ;;  %v679_v33 = vadd.f32 1.0, %v1912_v41  ;;  %1707 = vmatprep.mubr.bf16.mxu1 %v737_v39  ;;  %v715_v39 = vmul.f32 %v2485_v54, %v418_v63 }
 0x1a7   : > { %v2568_v51 = vmul.f32 0.5, %v681_v37  ;;  %1708 = vmatmul.mubr.bf16.gmra.mrb[4].mxu1 %v738_v43  ;;  %v729_v59 = vadd.f32 %v713_v40, %v2555_v42  ;;  %v716_v40 = vmul.f32 %v2485_v54, %v419_v0  ;;  %v1875_v54 = vld [vmem:[#allocation9 + $0x10] sm:$0xff]  }
 0x1a8   : > { %v2570_v53 = vmul.f32 0.5, %v679_v33  ;;  %v727_v1 = vadd.f32 %v711_v47, %v2560_v45 }
 0x1a9   : > { %v730_v60 = vadd.f32 %v714_v44, %v2568_v51 }
 0x1aa   : > { %v1914_v61 = vpop.eup %1913  ;;  %v728_v2 = vadd.f32 %v712_v48, %v2570_v53 }
 0x1ab   : > { %v1916_v6 = vpop.eup %1915  ;;  %v684_v7 = vadd.f32 1.0, %v1914_v61  ;;  %v740_v17 = vpack.c.bf16 %v730_v60, %v729_v59  ;;  %v1874_v60 = vld [vmem:[#allocation9 + $0x8] sm:$0xff]   ;;  %v1876_v61 = vld [vmem:[#allocation9 + $0x18] sm:$0xff]  }
 0x1ac   : > { %v1918_v20 = vpop.eup %1917  ;;  %v682_v26 = vadd.f32 1.0, %v1916_v6  ;;  %v739_v25 = vpack.c.bf16 %v728_v2, %v727_v1  ;;  %1721 = vmatprep.subr.bf16.mxu0 %v1874_v60  ;;  %1752 = vmatprep.subr.bf16.mxu1 %v1874_v60  ;;  %v1877_v1 = vld [vmem:[#allocation9 + $0x20] sm:$0xff]   ;;  %v1878_v2 = vld [vmem:[#allocation9 + $0x28] sm:$0xff]   ;;  %v1879_v6 = vld [vmem:[#allocation9 + $0x30] sm:$0xff]  }
 0x1ad   : > { %v1920_v29 = vpop.eup %1919  ;;  %v2580_v32 = vmul.f32 0.5, %v684_v7  ;;  %v685_v34 = vadd.f32 1.0, %v1918_v20  ;;  %1722 = vmatpush3.bf16.msra.mxu0 %v1874_v60  ;;  %1760 = vmatpush3.bf16.msra.mxu1 %v1874_v60  ;;  %v1880_v7 = vld [vmem:[#allocation9 + $0x38] sm:$0xff]  }
 0x1ae   : > { %v2588_v36 = vmul.f32 0.5, %v682_v26  ;;  %v683_v38 = vadd.f32 1.0, %v1920_v29  ;;  %1711 = vmatprep.mubr.bf16.mxu1 %v739_v25  ;;  %1723 = vmatprep.subr.bf16.mxu0 %v1875_v54 }
 0x1af   : > { %v2596_v41 = vmul.f32 0.5, %v685_v34  ;;  %1712 = vmatmul.mubr.bf16.gmra.mrb[8].mxu1 %v740_v17  ;;  %v733_v43 = vadd.f32 %v717_v35, %v2580_v32  ;;  %1753 = vmatprep.subr.bf16.mxu1 %v1875_v54  ;;  %v2607_v17 = vld [vmem:[%s2781_s5] ss:$0 sm:$0xff] }
 0x1b0   : > { %v2598_v37 = vmul.f32 0.5, %v683_v38  ;;  %v731_v33 = vadd.f32 %v715_v39, %v2588_v36 }
 0x1b1   : > { %v734_v44 = vadd.f32 %v718_v24, %v2596_v41  ;;  %1724 = vmatpush3.bf16.msra.mxu0 %v1875_v54  ;;  %1761 = vmatpush3.bf16.msra.mxu1 %v1875_v54 }
 0x1b2   : > { %v732_v47 = vadd.f32 %v716_v40, %v2598_v37  ;;  %1725 = vmatprep.subr.bf16.mxu0 %v1876_v61  ;;  %1754 = vmatprep.subr.bf16.mxu1 %v1876_v61 }
 0x1b3   : > { %v742_v48 = vpack.c.bf16 %v734_v44, %v733_v43 }
 0x1b4   : > { %v741_v59 = vpack.c.bf16 %v732_v47, %v731_v33  ;;  %v2613_v47 = vstv %s1488_s23 }
 0x1b5   : > { %1726 = vmatpush3.bf16.msra.mxu0 %v1876_v61  ;;  %1762 = vmatpush3.bf16.msra.mxu1 %v1876_v61  ;;  %v2636_v4 = vmul.f32 %v2613_v47, %v410_v57  ;;  %v2651_v10 = vmul.f32 %v2613_v47, %v413_v28 }
 0x1b6   : > { %1715 = vmatprep.mubr.bf16.mxu1 %v741_v59  ;;  %1727 = vmatprep.subr.bf16.mxu0 %v1877_v1 }
 0x1b7   : > { %1716 = vmatmul.mubr.bf16.gmra.mrb[12].mxu1 %v742_v48  ;;  %1755 = vmatprep.subr.bf16.mxu1 %v1877_v1 }
 0x1b9   : > { %1728 = vmatpush3.bf16.msra.mxu0 %v1877_v1  ;;  %1763 = vmatpush3.bf16.msra.mxu1 %v1877_v1 }
 0x1ba   : > { %1729 = vmatprep.subr.bf16.mxu0 %v1878_v2  ;;  %1756 = vmatprep.subr.bf16.mxu1 %v1878_v2 }
 0x1bd   : > { %1730 = vmatpush3.bf16.msra.mxu0 %v1878_v2  ;;  %1764 = vmatpush3.bf16.msra.mxu1 %v1878_v2 }
 0x1be   : > { %1731 = vmatprep.subr.bf16.mxu0 %v1879_v6  ;;  %1757 = vmatprep.subr.bf16.mxu1 %v1879_v6 }
 0x1c1   : > { %1732 = vmatpush3.bf16.msra.mxu0 %v1879_v6  ;;  %1765 = vmatpush3.bf16.msra.mxu1 %v1879_v6  ;;  %v976_v6 = vmul.f32 %v2613_v47, %v406_v46 }
 0x1c2   : > { %1733 = vmatprep.subr.bf16.mxu0 %v1880_v7  ;;  %1758 = vmatprep.subr.bf16.mxu1 %v1880_v7 }
 0x1c5   : > { %1734 = vmatpush3.bf16.msra.mxu0 %v1880_v7  ;;  %1766 = vmatpush3.bf16.msra.mxu1 %v1880_v7  ;;  %v977_v7 = vmul.f32 %v2613_v47, %v407_v49 }
 0x272   : > { %v1705_v20 = vpop.f32.mrb[0].mxu1 }
 0x273   : > { %v857_v26 = vadd.f32 %v1705_v20, %v2607_v17  ;;  %v848_v25 = vpop.f32.mrb[1].mxu1 }
 0x274   : > { %v849_v29 = vadd.f32 %v2607_v17, %v848_v25  ;;  %v1706_v34 = vpop.f32.mrb[2].mxu1  ;;  %v978_v25 = vmul.f32 %v2613_v47, %v408_v50  ;;  %v2641_v50 = vmul.f32 %v2613_v47, %v411_v31 }
 0x275   : > { %v913_v35 = vmul.f32 0.5, %v857_v26  ;;  %v860_v24 = vadd.f32 %v1706_v34, %v2607_v17  ;;  %v851_v38 = vpop.f32.mrb[3].mxu1 }
 0x276   : > { %v911_v39 = vmul.f32 0.5, %v849_v29  ;;  %v852_v40 = vadd.f32 %v2607_v17, %v851_v38  ;;  %v2628_v29 = vstv %s1489_s20 }
 0x277   : > { %1921 = vtanh.f32 %v913_v35  ;;  %v914_v43 = vmul.f32 0.5, %v860_v24  ;;  %v979_v35 = vmul.f32 %v2613_v47, %v409_v52  ;;  %v2646_v24 = vmul.f32 %v2613_v47, %v412_v58 }
 0x278   : > { %1923 = vtanh.f32 %v911_v39  ;;  %v912_v44 = vmul.f32 0.5, %v852_v40  ;;  %v1011_v57 = vmul.f32 %v2628_v29, %v2506_v22  ;;  %v1012_v11 = vmul.f32 %v2628_v29, %v2508_v23 }
 0x279   : > { %1925 = vtanh.f32 %v914_v43  ;;  %v1009_v58 = vmul.f32 %v2628_v29, %v2504_v21  ;;  %v1010_v12 = vmul.f32 %v2628_v29, %v2512_v30  ;;  %v2664_v22 = vmul.f32 %v2628_v29, %v2536_v3 }
 0x27a   : > { %1927 = vtanh.f32 %v912_v44  ;;  %v1709_v33 = vpop.f32.mrb[4].mxu1  ;;  %v1017_v14 = vmul.f32 %v2628_v29, %v2560_v45  ;;  %v1021_v16 = vmul.f32 %v2628_v29, %v2588_v36  ;;  %v2727_v36 = vld [vmem:[%s2783_s7] ss:$0 sm:$0xff] }
 0x27b   : > { %v873_v48 = vadd.f32 %v1709_v33, %v2607_v17  ;;  %v864_v59 = vpop.f32.mrb[5].mxu1 }
 0x27c   : > { %v865_v60 = vadd.f32 %v2607_v17, %v864_v59  ;;  %v1710_v54 = vpop.f32.mrb[6].mxu1 }
 0x27d   : > { %v917_v61 = vmul.f32 0.5, %v873_v48  ;;  %v876_v1 = vadd.f32 %v1710_v54, %v2607_v17  ;;  %v867_v2 = vpop.f32.mrb[7].mxu1 }
 0x27e   : > { %v915_v20 = vmul.f32 0.5, %v865_v60  ;;  %v868_v26 = vadd.f32 %v2607_v17, %v867_v2 }
 0x27f   : > { %1929 = vtanh.f32 %v917_v61  ;;  %v918_v34 = vmul.f32 0.5, %v876_v1 }
 0x280   : > { %1931 = vtanh.f32 %v915_v20  ;;  %v916_v46 = vmul.f32 0.5, %v868_v26 }
 0x281   : > { %v1922_v49 = vpop.eup %1921  ;;  %1933 = vtanh.f32 %v918_v34 }
 0x282   : > { %v1924_v52 = vpop.eup %1923  ;;  %v945_v31 = vadd.f32 1.0, %v1922_v49  ;;  %1935 = vtanh.f32 %v916_v46  ;;  %v1713_v38 = vpop.f32.mrb[8].mxu1 }
 0x283   : > { %v1926_v39 = vpop.eup %1925  ;;  %v943_v28 = vadd.f32 1.0, %v1924_v52  ;;  %v889_v40 = vadd.f32 %v1713_v38, %v2607_v17  ;;  %v880_v43 = vpop.f32.mrb[9].mxu1 }
 0x284   : > { %v1928_v44 = vpop.eup %1927  ;;  %v961_v23 = vmul.f32 0.5, %v945_v31  ;;  %v946_v33 = vadd.f32 1.0, %v1926_v39  ;;  %v881_v48 = vadd.f32 %v2607_v17, %v880_v43  ;;  %v1714_v59 = vpop.f32.mrb[10].mxu1  ;;  %v1013_v39 = vmul.f32 %v2628_v29, %v2533_v62 }
 0x285   : > { %v959_v60 = vmul.f32 0.5, %v943_v28  ;;  %v944_v54 = vadd.f32 1.0, %v1928_v44  ;;  %v921_v21 = vmul.f32 0.5, %v889_v40  ;;  %v892_v61 = vadd.f32 %v1714_v59, %v2607_v17  ;;  %v883_v30 = vpop.f32.mrb[11].mxu1 }
 0x286   : > { %v994_v1 = vadd.f32 %v978_v25, %v961_v23  ;;  %v962_v2 = vmul.f32 0.5, %v946_v33  ;;  %v919_v20 = vmul.f32 0.5, %v881_v48  ;;  %v884_v26 = vadd.f32 %v2607_v17, %v883_v30 }
 0x287   : > { %v992_v34 = vadd.f32 %v976_v6, %v959_v60  ;;  %v960_v46 = vmul.f32 0.5, %v944_v54  ;;  %1937 = vtanh.f32 %v921_v21  ;;  %v922_v3 = vmul.f32 0.5, %v892_v61 }
 0x288   : > { %v1027_v49 = vadd.f32 %v1011_v57, %v994_v1  ;;  %v995_v52 = vadd.f32 %v979_v35, %v962_v2  ;;  %1939 = vtanh.f32 %v919_v20  ;;  %v920_v31 = vmul.f32 0.5, %v884_v26 }
 0x289   : > { %v1930_v38 = vpop.eup %1929  ;;  %v993_v28 = vadd.f32 %v977_v7, %v960_v46  ;;  %1941 = vtanh.f32 %v922_v3  ;;  %v1025_v40 = vadd.f32 %v1009_v58, %v992_v34  ;;  %v1016_v43 = vmul.f32 %v2628_v29, %v2538_v5 }
 0x28a   : > { %v1932_v25 = vpop.eup %1931  ;;  %v1028_v44 = vadd.f32 %v1012_v11, %v995_v52  ;;  %v949_v6 = vadd.f32 1.0, %v1930_v38  ;;  %1943 = vtanh.f32 %v920_v31  ;;  %v1717_v23 = vpop.f32.mrb[12].mxu1  ;;  %v1014_v35 = vmul.f32 %v2628_v29, %v2542_v9 }
 0x28b   : > { %v1934_v33 = vpop.eup %1933  ;;  %v947_v57 = vadd.f32 1.0, %v1932_v25  ;;  %v905_v48 = vadd.f32 %v1717_v23, %v2607_v17  ;;  %v896_v59 = vpop.f32.mrb[13].mxu1  ;;  %v1026_v62 = vadd.f32 %v1010_v12, %v993_v28 }
 0x28c   : > { %v1936_v7 = vpop.eup %1935  ;;  %v1042_v60 = vpack.c.bf16 %v1028_v44, %v1027_v49  ;;  %v965_v58 = vmul.f32 0.5, %v949_v6  ;;  %v950_v54 = vadd.f32 1.0, %v1934_v33  ;;  %v897_v21 = vadd.f32 %v2607_v17, %v896_v59  ;;  %v1718_v5 = vpop.f32.mrb[14].mxu1 }
 0x28d   : > { %v963_v11 = vmul.f32 0.5, %v947_v57  ;;  %v948_v61 = vadd.f32 1.0, %v1936_v7  ;;  %v925_v30 = vmul.f32 0.5, %v905_v48  ;;  %v908_v1 = vadd.f32 %v1718_v5, %v2607_v17  ;;  %v899_v2 = vpop.f32.mrb[15].mxu1 }
 0x28e   : > { %v998_v9 = vadd.f32 %v2646_v24, %v965_v58  ;;  %v966_v20 = vmul.f32 0.5, %v950_v54  ;;  %v923_v26 = vmul.f32 0.5, %v897_v21  ;;  %v900_v34 = vadd.f32 %v2607_v17, %v899_v2 }
 0x28f   : > { %v996_v12 = vadd.f32 %v2636_v4, %v963_v11  ;;  %v964_v46 = vmul.f32 0.5, %v948_v61  ;;  %1945 = vtanh.f32 %v925_v30  ;;  %v926_v3 = vmul.f32 0.5, %v908_v1 }
 0x290   : > { %v999_v49 = vadd.f32 %v2651_v10, %v966_v20  ;;  %1947 = vtanh.f32 %v923_v26  ;;  %v924_v52 = vmul.f32 0.5, %v900_v34  ;;  %v1041_v31 = vpack.c.bf16 %v1026_v62, %v1025_v40 }
 0x291   : > { %v1938_v38 = vpop.eup %1937  ;;  %v997_v28 = vadd.f32 %v2641_v50, %v964_v46  ;;  %1949 = vtanh.f32 %v926_v3  ;;  %v1029_v25 = vadd.f32 %v1013_v39, %v996_v12  ;;  %v1031_v24 = vadd.f32 %v2664_v22, %v998_v9 }
 0x292   : > { %v1940_v44 = vpop.eup %1939  ;;  %v986_v17 = vmul.f32 %v2613_v47, %v416_v8  ;;  %v953_v4 = vadd.f32 1.0, %v1938_v38  ;;  %1951 = vtanh.f32 %v924_v52  ;;  %1735 = vmatprep.mubr.bf16.mxu0 %v1041_v31  ;;  %v1032_v6 = vadd.f32 %v1016_v43, %v999_v49 }
 0x293   : > { %v1942_v10 = vpop.eup %1941  ;;  %v984_v40 = vmul.f32 %v2613_v47, %v414_v18  ;;  %v951_v23 = vadd.f32 1.0, %v1940_v44  ;;  %1736 = vmatmul.mubr.bf16.vlgmr.msra.gmra.mrb[16].mxu0 %v1042_v60  ;;  %v1030_v50 = vadd.f32 %v1014_v35, %v997_v28  ;;  %v987_v22 = vmul.f32 %v2613_v47, %v417_v19 }
 0x294   : > { %v1944_v39 = vpop.eup %1943  ;;  %v969_v33 = vmul.f32 0.5, %v953_v4  ;;  %v954_v57 = vadd.f32 1.0, %v1942_v10  ;;  %v1044_v8 = vpack.c.bf16 %v1032_v6, %v1031_v24  ;;  %v985_v43 = vmul.f32 %v2613_v47, %v415_v27 }
 0x295   : > { %v967_v48 = vmul.f32 0.5, %v951_v23  ;;  %v952_v59 = vadd.f32 1.0, %v1944_v39  ;;  %v1043_v62 = vpack.c.bf16 %v1030_v50, %v1029_v25  ;;  %v1019_v18 = vmul.f32 %v2628_v29, %v2555_v42 }
 0x296   : > { %v1002_v7 = vadd.f32 %v986_v17, %v969_v33  ;;  %v970_v35 = vmul.f32 0.5, %v954_v57  ;;  %v1020_v58 = vmul.f32 %v2628_v29, %v2568_v51  ;;  %v1018_v21 = vmul.f32 %v2628_v29, %v2570_v53 }
 0x297   : > { %v1000_v60 = vadd.f32 %v984_v40, %v967_v48  ;;  %v968_v19 = vmul.f32 0.5, %v952_v59  ;;  %1739 = vmatprep.mubr.bf16.mxu0 %v1043_v62  ;;  %v990_v61 = vmul.f32 %v2613_v47, %v420_v55  ;;  %v988_v51 = vmul.f32 %v2613_v47, %v418_v63 }
 0x298   : > { %v1035_v13 = vadd.f32 %v1019_v18, %v1002_v7  ;;  %v1003_v54 = vadd.f32 %v987_v22, %v970_v35  ;;  %v991_v53 = vmul.f32 %v2613_v47, %v421_v56  ;;  %v989_v55 = vmul.f32 %v2613_v47, %v419_v0 }
 0x299   : > { %v1946_v27 = vpop.eup %1945  ;;  %v1001_v5 = vadd.f32 %v985_v43, %v968_v19  ;;  %v1033_v11 = vadd.f32 %v1017_v14, %v1000_v60  ;;  %v1023_v63 = vmul.f32 %v2628_v29, %v2580_v32  ;;  %v1024_v28 = vmul.f32 %v2628_v29, %v2596_v41 }
 0x29a   : > { %v1948_v42 = vpop.eup %1947  ;;  %v1036_v45 = vadd.f32 %v1020_v58, %v1003_v54  ;;  %v957_v30 = vadd.f32 1.0, %v1946_v27  ;;  %v1022_v47 = vmul.f32 %v2628_v29, %v2598_v37 }
 0x29b   : > { %v1950_v1 = vpop.eup %1949  ;;  %v955_v2 = vadd.f32 1.0, %v1948_v42  ;;  %1740 = vmatmul.mubr.bf16.gmra.mrb[20].mxu0 %v1044_v8  ;;  %v1034_v9 = vadd.f32 %v1018_v21, %v1001_v5 }
 0x29c   : > { %v1952_v20 = vpop.eup %1951  ;;  %v1046_v26 = vpack.c.bf16 %v1036_v45, %v1035_v13  ;;  %v973_v34 = vmul.f32 0.5, %v957_v30  ;;  %v958_v12 = vadd.f32 1.0, %v1950_v1 }
 0x29d   : > { %v971_v46 = vmul.f32 0.5, %v955_v2  ;;  %v956_v3 = vadd.f32 1.0, %v1952_v20  ;;  %v1045_v49 = vpack.c.bf16 %v1034_v9, %v1033_v11 }
 0x29e   : > { %v1006_v52 = vadd.f32 %v990_v61, %v973_v34  ;;  %v974_v31 = vmul.f32 0.5, %v958_v12 }
 0x29f   : > { %v1004_v38 = vadd.f32 %v988_v51, %v971_v46  ;;  %v972_v56 = vmul.f32 0.5, %v956_v3  ;;  %1743 = vmatprep.mubr.bf16.mxu1 %v1045_v49 }
 0x2a0   : > { %v1007_v15 = vadd.f32 %v991_v53, %v974_v31  ;;  %1744 = vmatmul.mubr.bf16.vlgmr.msra.gmra.mrb[16].mxu1 %v1046_v26  ;;  %v1039_v0 = vadd.f32 %v1023_v63, %v1006_v52 }
 0x2a1   : > { %v1005_v25 = vadd.f32 %v989_v55, %v972_v56  ;;  %v1037_v24 = vadd.f32 %v1021_v16, %v1004_v38 }
 0x2a2   : > { %v1040_v32 = vadd.f32 %v1024_v28, %v1007_v15 }
 0x2a3   : > { %v1038_v44 = vadd.f32 %v1022_v47, %v1005_v25 }
 0x2a4   : > { %v1048_v17 = vpack.c.bf16 %v1040_v32, %v1039_v0 }
 0x2a5   : > { %v1047_v4 = vpack.c.bf16 %v1038_v44, %v1037_v24 }
 0x2a7   : > { %1747 = vmatprep.mubr.bf16.mxu1 %v1047_v4 }
 0x2a8   : > { %1748 = vmatmul.mubr.bf16.gmra.mrb[20].mxu1 %v1048_v17 }
 0x366   : > { %v1737_v41 = vpop.f32.mrb[16].mxu0 }
 0x367   : > { %v1163_v6 = vadd.f32 %v1737_v41, %v2727_v36  ;;  %v1154_v10 = vpop.f32.mrb[17].mxu0 }
 0x368   : > { %v1155_v37 = vadd.f32 %v2727_v36, %v1154_v10  ;;  %v1738_v29 = vpop.f32.mrb[18].mxu0 }
 0x369   : > { %v1219_v40 = vmul.f32 0.5, %v1163_v6  ;;  %v1166_v23 = vadd.f32 %v1738_v29, %v2727_v36  ;;  %v1157_v50 = vpop.f32.mrb[19].mxu0 }
 0x36a   : > { %v1217_v39 = vmul.f32 0.5, %v1155_v37  ;;  %v1158_v22 = vadd.f32 %v2727_v36, %v1157_v50 }
 0x36b   : > { %1953 = vtanh.f32 %v1219_v40  ;;  %v1220_v33 = vmul.f32 0.5, %v1166_v23 }
 0x36c   : > { %1955 = vtanh.f32 %v1217_v39  ;;  %v1218_v57 = vmul.f32 0.5, %v1158_v22 }
 0x36d   : > { %1957 = vtanh.f32 %v1220_v33 }
 0x36e   : > { %1959 = vtanh.f32 %v1218_v57  ;;  %v1741_v8 = vpop.f32.mrb[20].mxu0 }
 0x36f   : > { %v1179_v43 = vadd.f32 %v1741_v8, %v2727_v36  ;;  %v1170_v48 = vpop.f32.mrb[21].mxu0 }
 0x370   : > { %v1171_v59 = vadd.f32 %v2727_v36, %v1170_v48  ;;  %v1742_v62 = vpop.f32.mrb[22].mxu0 }
 0x371   : > { %v1223_v18 = vmul.f32 0.5, %v1179_v43  ;;  %v1182_v7 = vadd.f32 %v1742_v62, %v2727_v36  ;;  %v1173_v35 = vpop.f32.mrb[23].mxu0 }
 0x372   : > { %v1221_v14 = vmul.f32 0.5, %v1171_v59  ;;  %v1174_v60 = vadd.f32 %v2727_v36, %v1173_v35 }
 0x373   : > { %1961 = vtanh.f32 %v1223_v18  ;;  %v1224_v19 = vmul.f32 0.5, %v1182_v7  ;;  %v1745_v58 = vpop.f32.mrb[16].mxu1 }
 0x374   : > { %1963 = vtanh.f32 %v1221_v14  ;;  %v1222_v13 = vmul.f32 0.5, %v1174_v60  ;;  %v1195_v54 = vadd.f32 %v1745_v58, %v2727_v36  ;;  %v1186_v27 = vpop.f32.mrb[17].mxu1 }
 0x375   : > { %v1954_v21 = vpop.eup %1953  ;;  %1965 = vtanh.f32 %v1224_v19  ;;  %v1187_v5 = vadd.f32 %v2727_v36, %v1186_v27  ;;  %v1746_v11 = vpop.f32.mrb[18].mxu1 }
 0x376   : > { %v1956_v42 = vpop.eup %1955  ;;  %v1251_v61 = vadd.f32 1.0, %v1954_v21  ;;  %1967 = vtanh.f32 %v1222_v13  ;;  %v1227_v45 = vmul.f32 0.5, %v1195_v54  ;;  %v1198_v30 = vadd.f32 %v1746_v11, %v2727_v36  ;;  %v1189_v1 = vpop.f32.mrb[19].mxu1 }
 0x377   : > { %v1958_v51 = vpop.eup %1957  ;;  %v1249_v2 = vadd.f32 1.0, %v1956_v42  ;;  %v1225_v9 = vmul.f32 0.5, %v1187_v5  ;;  %v1190_v20 = vadd.f32 %v2727_v36, %v1189_v1 }
 0x378   : > { %v1960_v53 = vpop.eup %1959  ;;  %v1252_v26 = vadd.f32 1.0, %v1958_v51  ;;  %1969 = vtanh.f32 %v1227_v45  ;;  %v1228_v34 = vmul.f32 0.5, %v1198_v30  ;;  %v1267_v46 = vmul.f32 0.5, %v1251_v61 }
 0x379   : > { %v1250_v12 = vadd.f32 1.0, %v1960_v53  ;;  %1971 = vtanh.f32 %v1225_v9  ;;  %v1226_v55 = vmul.f32 0.5, %v1190_v20  ;;  %v1265_v49 = vmul.f32 0.5, %v1249_v2 }
 0x37a   : > { %v1268_v3 = vmul.f32 0.5, %v1252_v26  ;;  %1973 = vtanh.f32 %v1228_v34 }
 0x37b   : > { %v1266_v63 = vmul.f32 0.5, %v1250_v12  ;;  %1975 = vtanh.f32 %v1226_v55  ;;  %v1749_v52 = vpop.f32.mrb[20].mxu1 }
 0x37c   : > { %v1568_v31 = vpack.c.bf16 %v1268_v3, %v1267_v46  ;;  %v1211_v16 = vadd.f32 %v1749_v52, %v2727_v36  ;;  %v1202_v38 = vpop.f32.mrb[21].mxu1 }
 0x37d   : > { %v1962_v56 = vpop.eup %1961  ;;  %v1563_v28 = vpack.c.bf16 %v1266_v63, %v1265_v49  ;;  %v1203_v15 = vadd.f32 %v2727_v36, %v1202_v38  ;;  %v1750_v0 = vpop.f32.mrb[22].mxu1 }
 0x37e   : > { %v1964_v47 = vpop.eup %1963  ;;  %1600 = vst [vmem:[%s2749_s18 + $0x8] sm:$0xff] %v1568_v31   ;;  %v1255_v25 = vadd.f32 1.0, %v1962_v56  ;;  %v1231_v24 = vmul.f32 0.5, %v1211_v16  ;;  %v1214_v32 = vadd.f32 %v1750_v0, %v2727_v36  ;;  %v1205_v44 = vpop.f32.mrb[23].mxu1 }
 0x37f   : > { %v1966_v17 = vpop.eup %1965  ;;  %1564 = vst [vmem:[%s2749_s18] sm:$0xff] %v1563_v28   ;;  %v1253_v4 = vadd.f32 1.0, %v1964_v47  ;;  %v1229_v41 = vmul.f32 0.5, %v1203_v15  ;;  %v1206_v6 = vadd.f32 %v2727_v36, %v1205_v44 }
 0x380   : > { %v1968_v10 = vpop.eup %1967  ;;  %v1256_v37 = vadd.f32 1.0, %v1966_v17  ;;  %1977 = vtanh.f32 %v1231_v24  ;;  %v1232_v29 = vmul.f32 0.5, %v1214_v32  ;;  %v1271_v39 = vmul.f32 0.5, %v1255_v25 }
 0x381   : > { %v1254_v40 = vadd.f32 1.0, %v1968_v10  ;;  %1979 = vtanh.f32 %v1229_v41  ;;  %v1230_v23 = vmul.f32 0.5, %v1206_v6  ;;  %v1269_v57 = vmul.f32 0.5, %v1253_v4 }
 0x382   : > { %v1970_v50 = vpop.eup %1969  ;;  %v1272_v22 = vmul.f32 0.5, %v1256_v37  ;;  %1981 = vtanh.f32 %v1232_v29 }
 0x383   : > { %v1972_v33 = vpop.eup %1971  ;;  %v1270_v8 = vmul.f32 0.5, %v1254_v40  ;;  %v1259_v43 = vadd.f32 1.0, %v1970_v50  ;;  %1983 = vtanh.f32 %v1230_v23 }
 0x384   : > { %v1974_v48 = vpop.eup %1973  ;;  %v1578_v36 = vpack.c.bf16 %v1272_v22, %v1271_v39  ;;  %v1257_v59 = vadd.f32 1.0, %v1972_v33 }
 0x385   : > { %v1976_v62 = vpop.eup %1975  ;;  %v1573_v18 = vpack.c.bf16 %v1270_v8, %v1269_v57  ;;  %v1260_v7 = vadd.f32 1.0, %v1974_v48  ;;  %v1275_v14 = vmul.f32 0.5, %v1259_v43 }
 0x386   : > { %1602 = vst [vmem:[%s2749_s18 + $0x18] sm:$0xff] %v1578_v36   ;;  %v1258_v35 = vadd.f32 1.0, %v1976_v62  ;;  %v1273_v19 = vmul.f32 0.5, %v1257_v59 }
 0x387   : > { %1601 = vst [vmem:[%s2749_s18 + $0x10] sm:$0xff] %v1573_v18   ;;  %v1276_v60 = vmul.f32 0.5, %v1260_v7 }
 0x388   : > { %v1274_v58 = vmul.f32 0.5, %v1258_v35 }
 0x389   : > { %v1588_v13 = vpack.c.bf16 %v1276_v60, %v1275_v14 }
 0x38a   : > { %v1978_v54 = vpop.eup %1977  ;;  %v1583_v27 = vpack.c.bf16 %v1274_v58, %v1273_v19 }
 0x38b   : > { %v1980_v21 = vpop.eup %1979  ;;  %1604 = vst [vmem:[%s2749_s18 + $0x28] sm:$0xff] %v1588_v13   ;;  %v1263_v5 = vadd.f32 1.0, %v1978_v54 }
 0x38c   : > { %v1982_v11 = vpop.eup %1981  ;;  %1603 = vst [vmem:[%s2749_s18 + $0x20] sm:$0xff] %v1583_v27   ;;  %v1261_v42 = vadd.f32 1.0, %v1980_v21 }
 0x38d   : > { %v1984_v61 = vpop.eup %1983  ;;  %v1264_v45 = vadd.f32 1.0, %v1982_v11  ;;  %v1279_v1 = vmul.f32 0.5, %v1263_v5 }
 0x38e   : > { %v1262_v30 = vadd.f32 1.0, %v1984_v61  ;;  %v1277_v2 = vmul.f32 0.5, %v1261_v42 }
 0x38f   : > { %v1280_v51 = vmul.f32 0.5, %v1264_v45 }
 0x390   : > { %v1278_v9 = vmul.f32 0.5, %v1262_v30 }
 0x391   : > { %v1598_v20 = vpack.c.bf16 %v1280_v51, %v1279_v1 }
 0x392   : > { %v1593_v53 = vpack.c.bf16 %v1278_v9, %v1277_v2 }
 0x393   : > { %1606 = vst [vmem:[%s2749_s18 + $0x38] sm:$0xff] %v1598_v20  }
 0x394   : > { %1605 = vst [vmem:[%s2749_s18 + $0x30] sm:$0xff] %v1593_v53  }
 0x395 PF: > { %s2800_s9 = smov %s2365_s27  ;;  %p21_p3 = scmp.ge.s32.totalorder %s2354_s26, 6  }
 0x396   : > { %s2801_s27 = smov %s2152_s28  ;;  %s2802_s28 = smov %s2156_s29 }
 0x397   : > { %s2803_s29 = smov %s2800_s9  ;;  %s2804_s30 = smov %s2354_s26 }
 0x398   :  { %23 = sbr.rel (!%p21_p3) target bundleno = 6 (0x6), region = 109 }
 0x39f   :  { %1383 = vsyncpa [#allocation3], 1 }
 0x3a0   :  { %1385 = vsyncpa [#allocation3 + $0x1], 1 }
 0x3a1   :  { %1386 = vsyncpa [#allocation7], 1 }
 0x3a2   :  { %1387 = vsyncpa [#allocation10], 1 }
 0x3a3   :  { %1388 = vsyncpa [#allocation4], 1 }
 0x3a4   :  { %1390 = vsyncpa [#allocation4 + $0x1], 1 }

// kernel: _mlp_decoder_call.1
= control target key start
LH: loop header
LB: loop body
LE: loop exit
PB: predicated region body
PF: predicated region fallthrough
CT: control target
= control target key end

     0   :  { %13 = vsyncpa [#allocation4], 0  ;;  %s2776_s0 = inlined_call_operand.vmem [shape: f32[3], index: 0, kind: input, shape index: {}]   ;;  %s2777_s1 = inlined_call_operand.hbm [shape: bf16[512,128], index: 1, kind: input, shape index: {}]   ;;  %s2778_s2 = inlined_call_operand.hbm [shape: bf16[128,128], index: 2, kind: input, shape index: {}]   ;;  %s2779_s3 = inlined_call_operand.vmem [shape: f32[1,128], index: 3, kind: input, shape index: {}]   ;;  %s2780_s4 = inlined_call_operand.hbm [shape: bf16[128,128], index: 4, kind: input, shape index: {}]   ;;  %s2781_s5 = inlined_call_operand.vmem [shape: f32[1,128], index: 5, kind: input, shape index: {}]   ;;  %s2782_s6 = inlined_call_operand.hbm [shape: bf16[128,128], index: 6, kind: input, shape index: {}]   ;;  %s2783_s7 = inlined_call_operand.vmem [shape: f32[1,128], index: 7, kind: input, shape index: {}]   ;;  %s2784_s8 = inlined_call_operand.vmem [shape: bf16[512,128], index: 8, kind: output, shape index: {}]  }
   0x1   :  { %14 = vsyncpa [#allocation3], 0 }
   0x2   :  { %16 = vsyncpa [#allocation3 + $0x1], 0 }
   0x3   :  { %17 = vsyncpa [#allocation7], 0 }
   0x4   :  { %18 = vsyncpa [#allocation10], 0  ;;  %s2214_s27 = smov 0   ;;  %s2216_s28 = smov 0  }
   0x5   :  { %s2218_s29 = smov 0   ;;  %s2220_s30 = smov 0  }
   0x6 LB: > { %s2789_s9 = sadd.s32 4294967295, %s2160_s30   ;;  %p65_p0 = scmp.ne.s32.totalorder %s2152_s28, %s2148_s27  ;;  %s2160_s30 = sphi %s2220_s30, %s2804_s30   ;;  %s2156_s29 = sphi %s2218_s29, %s2803_s29   ;;  %s2152_s28 = sphi %s2216_s28, %s2802_s28   ;;  %s2148_s27 = sphi %s2214_s27, %s2801_s27  }
   0x7   : > { %p2236_p1 = scmp.eq.s32.totalorder %s2789_s9, 0  ;;  %p1471_p2 = scmp.ge.s32.totalorder %s2160_s30, 1 }
   0x8   : > { %p228_p3 = scmp.lt.s32.totalorder %s2160_s30, 5  ;;  %s2162_s13 = smov [#allocation6]  }
   0x9   : > { %s2790_s10 = scalar_select %p2236_p1, 1, 0 }
   0xa   : > { %p2244_p4 = por %p2236_p1, %p65_p0  ;;  %p2248_p5 = pnand %p1471_p2, %p228_p3 }
   0xb   : > { %s251_s14 = sshll.u32 %s2162_s13, 4  ;;  %s241_s17 = sshll.u32 %s2776_s0, 4  ;;  %s2252_s14 = int_to_ptr.vmem [resolvable:$true] %s251_s14  ;;  %s2265_s17 = int_to_ptr.vmem [resolvable:$true] %s241_s17 }
   0xc   : > { %s2791_s11 = scalar_select %p2244_p4, 1, 0 }
   0xd   : > { %s2792_s12 = scalar_select %p2248_p5, 1, 0 }
   0xe   : > { %p1785_p6 = pneg %p2248_p5  ;;  %s2163_s19 = smov [#allocation8]  }
   0xf   : > { %s2267_s20 = sshll.u32 %s2163_s19, 4  ;;  %s1985_s23 = scalar_lea.hbm %s2778_s2, 1024  ;;  %s268_s20 = int_to_ptr.vmem [resolvable:$true] %s2267_s20 }
  0x10   : > { %p2261_p7 = pnand %p1785_p6, %p2236_p1  ;;  %p1986_p8 = scmp.ne.s32.totalorder %s2778_s2, %s1985_s23 }
  0x11   : > { %p1992_p12 = scmp.lt.u32.totalorder %s1985_s23, %s2778_s2 }
  0x12   : > { %p2277_p9 = pneg %p2261_p7 }
  0x14   : > { %p1988_p10 = pnand %p2277_p9, %p1986_p8 }
  0x16   : > { %p1989_p11 = pneg %p1988_p10 }
  0x18   : > { %p1994_p13 = pnand %p1992_p12, %p1989_p11 }
  0x1a   : > { %1997 = shalt.err (!%p1994_p13)
}
  0x1b   : > { %s1998_s15 = scalar_lea.vmem %s2252_s14, 1024  ;;  %p2006_p6 = scmp.lt.s32.totalorder %s2252_s14, %s2252_s14 }
  0x1c   : > { %p1999_p0 = scmp.ne.s32.totalorder %s2252_s14, %s1998_s15  ;;  %p2007_p4 = scmp.lt.s32.totalorder %s1998_s15, %s1998_s15 }
  0x1e   : > { %p2001_p2 = pnand %p1999_p0, %p2277_p9  ;;  %p2008_p8 = por %p2007_p4, %p2006_p6 }
  0x20   : > { %p2002_p3 = pneg %p2001_p2 }
  0x22   : > { %p2009_p10 = pnand %p2008_p8, %p2002_p3 }
  0x24   : > { %2012 = shalt.err (!%p2009_p10)
}
  0x25   : > { %s2164_s16 = smov 64   ;;  %s2165_s19 = smov 4  }
  0x26   : > { %1791 = dma.hbm_to_vmem [thread:$0]  (!%p2261_p7), %s2778_s2, 1024, %s2252_s14, [#allocation7], %s2164_s16, %s2164_s16, %s2165_s19  }
  0x27   : > { %s2013_s23 = scalar_lea.vmem %s2265_s17, 16  ;;  %p2021_p13 = scmp.lt.s32.totalorder %s2265_s17, %s2265_s17 }
  0x28   : > { %p2014_p4 = scmp.ne.s32.totalorder %s2265_s17, %s2013_s23  ;;  %p2022_p0 = scmp.lt.s32.totalorder %s2013_s23, %s2013_s23 }
  0x2a   : > { %p2016_p11 = pnand %p2014_p4, %p2277_p9  ;;  %p2023_p2 = por %p2022_p0, %p2021_p13 }
  0x2c   : > { %p2017_p12 = pneg %p2016_p11 }
  0x2e   : > { %p2024_p3 = pnand %p2023_p2, %p2017_p12 }
  0x30   : > { %2027 = shalt.err (!%p2024_p3)
}
  0x31   : > { %s2166_s24 = smov [#allocation2]   ;;  %s2028_s27 = scalar_lea.hbm %s2780_s4, 1024 }
  0x32   : > { %1788 = dma.vmem_to_smem (!%p2261_p7), %s2265_s17, 16, %s2166_s24, [#allocation4]  }
  0x33   : > { %p2029_p6 = scmp.ne.s32.totalorder %s2780_s4, %s2028_s27  ;;  %p2035_p4 = scmp.lt.u32.totalorder %s2028_s27, %s2780_s4 }
  0x35   : > { %p2031_p8 = pnand %p2029_p6, %p2277_p9 }
  0x37   : > { %p2032_p10 = pneg %p2031_p8 }
  0x39   : > { %p2037_p11 = pnand %p2035_p4, %p2032_p10 }
  0x3b   : > { %2040 = shalt.err (!%p2037_p11)
}
  0x3c   : > { %s2041_s23 = scalar_lea.vmem %s268_s20, 1024  ;;  %p2049_p2 = scmp.lt.s32.totalorder %s268_s20, %s268_s20 }
  0x3d   : > { %p2042_p12 = scmp.ne.s32.totalorder %s268_s20, %s2041_s23  ;;  %p2050_p3 = scmp.lt.s32.totalorder %s2041_s23, %s2041_s23 }
  0x3f   : > { %p2044_p13 = pnand %p2042_p12, %p2277_p9  ;;  %p2051_p1 = por %p2050_p3, %p2049_p2 }
  0x41   : > { %p2045_p0 = pneg %p2044_p13 }
  0x43   : > { %p2052_p5 = pnand %p2051_p1, %p2045_p0 }
  0x45   : > { %2055 = shalt.err (!%p2052_p5)
}
  0x46   : > { %1794 = dma.hbm_to_vmem [thread:$0]  (!%p2261_p7), %s2780_s4, 1024, %s268_s20, [#allocation7], %s2164_s16, %s2164_s16, %s2165_s19  }
  0x47   : > { %s2167_s14 = smov [#allocation9]   ;;  %s2056_s15 = scalar_lea.hbm %s2782_s6, 1024 }
  0x48   : > { %s283_s25 = sshll.u32 %s2167_s14, 4  ;;  %p2057_p1 = scmp.ne.s32.totalorder %s2782_s6, %s2056_s15  ;;  %s284_s25 = int_to_ptr.vmem [resolvable:$true] %s283_s25 }
  0x49   : > { %p2063_p8 = scmp.lt.u32.totalorder %s2056_s15, %s2782_s6 }
  0x4a   : > { %p2059_p5 = pnand %p2057_p1, %p2277_p9 }
  0x4c   : > { %p2060_p6 = pneg %p2059_p5 }
  0x4e   : > { %p2065_p10 = pnand %p2063_p8, %p2060_p6 }
  0x50   : > { %2068 = shalt.err (!%p2065_p10)
}
  0x51   : > { %s2069_s20 = scalar_lea.vmem %s284_s25, 1024  ;;  %p2077_p13 = scmp.lt.s32.totalorder %s284_s25, %s284_s25 }
  0x52   : > { %p2070_p4 = scmp.ne.s32.totalorder %s284_s25, %s2069_s20  ;;  %p2078_p0 = scmp.lt.s32.totalorder %s2069_s20, %s2069_s20 }
  0x54   : > { %p2072_p11 = pnand %p2070_p4, %p2277_p9  ;;  %p2079_p2 = por %p2078_p0, %p2077_p13 }
  0x56   : > { %p2073_p12 = pneg %p2072_p11 }
  0x58   : > { %p2080_p3 = pnand %p2079_p2, %p2073_p12 }
  0x5a   : > { %2083 = shalt.err (!%p2080_p3)
}
  0x5b   : > { %1797 = dma.hbm_to_vmem [thread:$0]  (!%p2261_p7), %s2782_s6, 1024, %s284_s25, [#allocation10], %s2164_s16, %s2164_s16, %s2165_s19  }
  0x5c   : > { %s2354_s26 = sadd.s32 1, %s2160_s30   ;;  %s52_s18 = sadd.s32 1, %s2156_s29 }
  0x5d   : > { %s49_s24 = ssub.s32 %s2160_s30, %s2354_s26  ;;  %p59_p9 = scmp.ne.s32.totalorder %s2156_s29, %s2152_s28 }
  0x5e   : > { %p50_p1 = scmp.eq.s32.totalorder %s49_s24, 0  ;;  %p60_p5 = scmp.eq.s32.totalorder %s2160_s30, 0 }
  0x5f   : > { %p1806_p6 = scmp.lt.s32.totalorder %s2160_s30, 4  ;;  %s300_s14 = sand.u32 1, %s2156_s29  }
  0x60   : > { %s2365_s27 = scalar_select %p50_p1, %s2156_s29, %s52_s18  }
  0x61   : > { %p61_p8 = por %p60_p5, %p59_p9  ;;  %s1477_s13 = sshll.u32 %s300_s14, 6 }
  0x62   : > { %s1543_s15 = sshll.u32 %s2160_s30, 10  ;;  %s304_s25 = scalar_lea.vmem [#allocation5], %s1477_s13 }
  0x63   : > { %s2371_s23 = scalar_lea.hbm %s2777_s1, %s1543_s15  ;;  %s311_s20 = sshll.u32 %s304_s25, 4  ;;  %s2377_s20 = int_to_ptr.vmem [resolvable:$true] %s311_s20 }
  0x64   : > { %p2373_p7 = pnand %p1806_p6, %p61_p8  ;;  %s2379_s17 = scalar_lea.sflag [#allocation3], %s300_s14 }
  0x65   : > { %s2084_s18 = scalar_lea.hbm %s2371_s23, 1024  ;;  %s2089_s15 = scalar_lea.hbm %s2777_s1, 4096 }
  0x66   : > { %p2085_p10 = scmp.ne.s32.totalorder %s2371_s23, %s2084_s18  ;;  %p2086_p4 = pneg %p2373_p7 }
  0x67   : > { %p2090_p13 = scmp.lt.u32.totalorder %s2371_s23, %s2777_s1  ;;  %p2091_p0 = scmp.lt.u32.totalorder %s2089_s15, %s2084_s18 }
  0x68   : > { %p2087_p11 = pnand %p2086_p4, %p2085_p10  ;;  %p2093_p3 = scmp.lt.u32.totalorder %s2084_s18, %s2371_s23 }
  0x69   : > { %p2092_p2 = por %p2091_p0, %p2090_p13 }
  0x6a   : > { %p2088_p12 = pneg %p2087_p11 }
  0x6b   : > { %p2094_p9 = por %p2093_p3, %p2092_p2 }
  0x6d   : > { %p2095_p1 = pnand %p2094_p9, %p2088_p12 }
  0x6f   : > { %2098 = shalt.err (!%p2095_p1)
}
  0x70   : > { %s2099_s14 = scalar_lea.vmem %s2377_s20, 1024  ;;  %s2168_s25 = smov [#allocation5]  }
  0x71   : > { %p2100_p5 = scmp.ne.s32.totalorder %s2377_s20, %s2099_s14  ;;  %s2104_s24 = sshll.u32 %s2168_s25, 4  ;;  %s2105_s24 = int_to_ptr.vmem [resolvable:$false] %s2104_s24 }
  0x72   : > { %s2106_s13 = scalar_lea.vmem %s2105_s24, 2048  ;;  %p2107_p10 = scmp.lt.s32.totalorder %s2377_s20, %s2105_s24 }
  0x73   : > { %p2102_p6 = pnand %p2100_p5, %p2086_p4  ;;  %p2108_p11 = scmp.lt.s32.totalorder %s2106_s13, %s2099_s14 }
  0x75   : > { %p2103_p8 = pneg %p2102_p6  ;;  %p2109_p13 = por %p2108_p11, %p2107_p10 }
  0x77   : > { %p2110_p0 = pnand %p2109_p13, %p2103_p8 }
  0x79   : > { %2113 = shalt.err (!%p2110_p0)
}
  0x7a   : > { %1801 = dma.hbm_to_vmem [thread:$0]  (!%p2373_p7), %s2371_s23, 1024, %s2377_s20, %s2379_s17, %s2164_s16, %s2164_s16, %s2165_s19  }
  0x7b   : > { %p2796_p4 = scmp.ne.s32.totalorder %s2792_s12, 0 }
  0x7c   : > { %p2797_p12 = scmp.ne.s32.totalorder (!%p2796_p4), %s2790_s10, 0 }
  0x7d   : > { %323 = sbr.rel (%p2796_p4) target bundleno = 917 (0x395), region = 52 }
  0x84   : > { %2131 = dma.done.wait (%p2797_p12), [#allocation4], 16  }
  0x85   : > { %2133 = vsyncadd (%p2797_p12), [#allocation4], 4294967280  ;;  %s329_s18 = sand.u32 1, %s2152_s28   ;;  %p2798_p2 = scmp.ne.s32.totalorder %s2791_s11, 0 }
  0x86   : > { %s1482_s9 = sshll.u32 %s329_s18, 6  ;;  %s330_s15 = scalar_lea.sflag [#allocation3], %s329_s18 }
  0x87   : > { %s2417_s21 = scalar_lea.vmem [#allocation5], %s1482_s9 }
  0x88   : > { %2135 = dma.done.wait (%p2798_p2), %s330_s15, 1024  }
  0x89   : > { %2137 = vsyncadd (%p2798_p2), %s330_s15, 4294966272 }
  0x8a   : > { %2139 = dma.done.wait (%p2797_p12), [#allocation7], 2048  }
  0x8b   : > { %2141 = vsyncadd (%p2797_p12), [#allocation7], 4294965248 }
  0x8c   : > { %2143 = dma.done.wait (%p2797_p12), [#allocation10], 1024  }
  0x8d   : > { %2145 = vsyncadd (%p2797_p12), [#allocation10], 4294966272 }
  0x8e   : > { %350 = sfence }
  0x8f   : > { %v1849_v0 = vld [vmem:[#allocation6] sm:$0xff]   ;;  %v1850_v1 = vld [vmem:[#allocation6 + $0x8] sm:$0xff]   ;;  %v1851_v2 = vld [vmem:[#allocation6 + $0x10] sm:$0xff]   ;;  %s387_s12 = sld [smem:[#allocation2]]  ;;  %s1488_s23 = sld [smem:[#allocation2 + $0x1]] }
  0x90   : > { %1655 = vmatprep.subr.bf16.mxu0 %v1849_v0  ;;  %v1852_v3 = vld [vmem:[#allocation6 + $0x18] sm:$0xff]   ;;  %v2432_v4 = vld [vmem:[%s2417_s21] sm:$0xff]   ;;  %v1854_v7 = vld [vmem:[#allocation6 + $0x28] sm:$0xff]   ;;  %s1489_s20 = sld [smem:[#allocation2 + $0x2]]  ;;  %s2799_s14 = sadd.s32 4294967295, %s2160_s30  }
  0x91   : > { %1656 = vmatpush3.bf16.msra.mxu0 %v1849_v0  ;;  %v1853_v5 = vld [vmem:[#allocation6 + $0x20] sm:$0xff]   ;;  %1671 = vmatprep.mubr.bf16.mxu0 %v2432_v4  ;;  %v1855_v8 = vld [vmem:[#allocation6 + $0x30] sm:$0xff]   ;;  %v1856_v9 = vld [vmem:[#allocation6 + $0x38] sm:$0xff]   ;;  %v406_v46 = vunpack.c.l.bf16 %v2432_v4  ;;  %v407_v49 = vunpack.c.h.bf16 %v2432_v4  ;;  %s1486_s25 = sshll.u32 %s2799_s14, 4 }
  0x92   : > { %1657 = vmatprep.subr.bf16.mxu0 %v1850_v1  ;;  %v1865_v6 = vld [vmem:[#allocation8] sm:$0xff]   ;;  %v2436_v10 = vld [vmem:[%s2417_s21 + $0x8] sm:$0xff]   ;;  %v2439_v11 = vld [vmem:[%s2417_s21 + $0x10] sm:$0xff]   ;;  %p381_p7 = scmp.lt.s32.totalorder %s1486_s25, 63 }
  0x93   : > { %1687 = vmatprep.subr.bf16.mxu1 %v1865_v6  ;;  %v2444_v12 = vld [vmem:[%s2417_s21 + $0x18] sm:$0xff]   ;;  %v2447_v13 = vld [vmem:[%s2417_s21 + $0x20] sm:$0xff]   ;;  %v2452_v14 = vld [vmem:[%s2417_s21 + $0x28] sm:$0xff]   ;;  %v408_v50 = vunpack.c.l.bf16 %v2436_v10  ;;  %v409_v52 = vunpack.c.h.bf16 %v2436_v10  ;;  %v410_v57 = vunpack.c.l.bf16 %v2439_v11 }
  0x94   : > { %1688 = vmatpush3.bf16.msra.mxu1 %v1865_v6  ;;  %v2455_v15 = vld [vmem:[%s2417_s21 + $0x30] sm:$0xff]   ;;  %v2460_v16 = vld [vmem:[%s2417_s21 + $0x38] sm:$0xff]   ;;  %v1866_v17 = vld [vmem:[#allocation8 + $0x8] sm:$0xff]   ;;  %v412_v58 = vunpack.c.l.bf16 %v2444_v12  ;;  %s2806_s25 = smov (!%p381_p7, %s1486_s25), 63 }
  0x95   : > { %1658 = vmatpush3.bf16.msra.mxu0 %v1850_v1  ;;  %1689 = vmatprep.subr.bf16.mxu1 %v1866_v17  ;;  %v1867_v18 = vld [vmem:[#allocation8 + $0x10] sm:$0xff]   ;;  %v1868_v19 = vld [vmem:[#allocation8 + $0x18] sm:$0xff]   ;;  %v1869_v20 = vld [vmem:[#allocation8 + $0x20] sm:$0xff]   ;;  %v2485_v54 = vstv %s387_s12  ;;  %s1487_s30 = sshll.u32 %s2806_s25, 2 }
  0x96   : > { %1659 = vmatprep.subr.bf16.mxu0 %v1851_v2  ;;  %v1870_v21 = vld [vmem:[#allocation8 + $0x28] sm:$0xff]   ;;  %v1871_v22 = vld [vmem:[#allocation8 + $0x30] sm:$0xff]   ;;  %v1872_v23 = vld [vmem:[#allocation8 + $0x38] sm:$0xff]   ;;  %v703_v1 = vmul.f32 %v2485_v54, %v406_v46  ;;  %s2749_s18 = scalar_lea.vmem %s2784_s8, %s1487_s30 }
  0x97   : > { %v2463_v24 = vld [vmem:[#allocation9] sm:$0xff]  }
  0x98   : > { %1690 = vmatpush3.bf16.msra.mxu1 %v1866_v17  ;;  %v2471_v25 = vld [vmem:[%s2779_s3] ss:$0 sm:$0xff] }
  0x99   : > { %1660 = vmatpush3.bf16.msra.mxu0 %v1851_v2  ;;  %1691 = vmatprep.subr.bf16.mxu1 %v1867_v18  ;;  %v705_v2 = vmul.f32 %v2485_v54, %v408_v50 }
  0x9a   : > { %1661 = vmatprep.subr.bf16.mxu0 %v1852_v3 }
  0x9c   : > { %1692 = vmatpush3.bf16.msra.mxu1 %v1867_v18 }
  0x9d   : > { %1662 = vmatpush3.bf16.msra.mxu0 %v1852_v3  ;;  %1693 = vmatprep.subr.bf16.mxu1 %v1868_v19 }
  0x9e   : > { %1663 = vmatprep.subr.bf16.mxu0 %v1853_v5 }
  0xa0   : > { %1694 = vmatpush3.bf16.msra.mxu1 %v1868_v19 }
  0xa1   : > { %1664 = vmatpush3.bf16.msra.mxu0 %v1853_v5  ;;  %1695 = vmatprep.subr.bf16.mxu1 %v1869_v20 }
  0xa2   : > { %1665 = vmatprep.subr.bf16.mxu0 %v1854_v7 }
  0xa4   : > { %1696 = vmatpush3.bf16.msra.mxu1 %v1869_v20 }
  0xa5   : > { %1666 = vmatpush3.bf16.msra.mxu0 %v1854_v7  ;;  %1697 = vmatprep.subr.bf16.mxu1 %v1870_v21 }
  0xa6   : > { %1667 = vmatprep.subr.bf16.mxu0 %v1855_v8 }
  0xa8   : > { %1698 = vmatpush3.bf16.msra.mxu1 %v1870_v21 }
  0xa9   : > { %1668 = vmatpush3.bf16.msra.mxu0 %v1855_v8  ;;  %1699 = vmatprep.subr.bf16.mxu1 %v1871_v22  ;;  %v704_v8 = vmul.f32 %v2485_v54, %v407_v49 }
  0xaa   : > { %1669 = vmatprep.subr.bf16.mxu0 %v1856_v9 }
  0xac   : > { %1700 = vmatpush3.bf16.msra.mxu1 %v1871_v22 }
  0xad   : > { %1670 = vmatpush3.bf16.msra.mxu0 %v1856_v9  ;;  %1701 = vmatprep.subr.bf16.mxu1 %v1872_v23  ;;  %v706_v9 = vmul.f32 %v2485_v54, %v409_v52 }
  0xae   : > { %1719 = vmatprep.subr.bf16.mxu0 %v2463_v24 }
  0xb0   : > { %1672 = vmatmul.mubr.bf16.vlgmr.msra.gmra.mrb[0].mxu0 %v2436_v10  ;;  %1702 = vmatpush3.bf16.msra.mxu1 %v1872_v23 }
  0xb1   : > { %1675 = vmatprep.mubr.bf16.mxu0 %v2439_v11  ;;  %1751 = vmatprep.subr.bf16.mxu1 %v2463_v24 }
  0xb2   : > { %1720 = vmatpush3.bf16.msra.mxu0 %v2463_v24 }
  0xb8   : > { %1676 = vmatmul.mubr.bf16.gmra.mrb[4].mxu0 %v2444_v12 }
  0xb9   : > { %1679 = vmatprep.mubr.bf16.mxu0 %v2447_v13 }
  0xc0   : > { %1680 = vmatmul.mubr.bf16.gmra.mrb[8].mxu0 %v2452_v14 }
  0xc1   : > { %1683 = vmatprep.mubr.bf16.mxu0 %v2455_v15 }
  0xc8   : > { %1684 = vmatmul.mubr.bf16.gmra.mrb[12].mxu0 %v2460_v16 }
 0x183   : > { %v1673_v26 = vpop.f32.mrb[0].mxu0 }
 0x184   : > { %v584_v27 = vadd.f32 %v1673_v26, %v2471_v25  ;;  %v575_v28 = vpop.f32.mrb[1].mxu0 }
 0x185   : > { %v576_v29 = vadd.f32 %v2471_v25, %v575_v28  ;;  %v1674_v30 = vpop.f32.mrb[2].mxu0  ;;  %v413_v28 = vunpack.c.h.bf16 %v2444_v12 }
 0x186   : > { %v640_v31 = vmul.f32 0.5, %v584_v27  ;;  %v587_v32 = vadd.f32 %v1674_v30, %v2471_v25  ;;  %v578_v33 = vpop.f32.mrb[3].mxu0 }
 0x187   : > { %v638_v34 = vmul.f32 0.5, %v576_v29  ;;  %v579_v35 = vadd.f32 %v2471_v25, %v578_v33  ;;  %v709_v33 = vmul.f32 %v2485_v54, %v412_v58 }
 0x188   : > { %1889 = vtanh.f32 %v640_v31  ;;  %v641_v36 = vmul.f32 0.5, %v587_v32  ;;  %v411_v31 = vunpack.c.h.bf16 %v2439_v11 }
 0x189   : > { %1891 = vtanh.f32 %v638_v34  ;;  %v639_v37 = vmul.f32 0.5, %v579_v35 }
 0x18a   : > { %1893 = vtanh.f32 %v641_v36 }
 0x18b   : > { %1895 = vtanh.f32 %v639_v37  ;;  %v1677_v38 = vpop.f32.mrb[4].mxu0  ;;  %v707_v37 = vmul.f32 %v2485_v54, %v410_v57 }
 0x18c   : > { %v600_v39 = vadd.f32 %v1677_v38, %v2471_v25  ;;  %v591_v40 = vpop.f32.mrb[5].mxu0 }
 0x18d   : > { %v592_v41 = vadd.f32 %v2471_v25, %v591_v40  ;;  %v1678_v42 = vpop.f32.mrb[6].mxu0 }
 0x18e   : > { %v644_v43 = vmul.f32 0.5, %v600_v39  ;;  %v603_v44 = vadd.f32 %v1678_v42, %v2471_v25  ;;  %v594_v45 = vpop.f32.mrb[7].mxu0 }
 0x18f   : > { %v642_v47 = vmul.f32 0.5, %v592_v41  ;;  %v595_v48 = vadd.f32 %v2471_v25, %v594_v45 }
 0x190   : > { %1897 = vtanh.f32 %v644_v43  ;;  %v645_v51 = vmul.f32 0.5, %v603_v44 }
 0x191   : > { %1899 = vtanh.f32 %v642_v47  ;;  %v643_v53 = vmul.f32 0.5, %v595_v48 }
 0x192   : > { %v1890_v55 = vpop.eup %1889  ;;  %1901 = vtanh.f32 %v645_v51  ;;  %v710_v51 = vmul.f32 %v2485_v54, %v413_v28 }
 0x193   : > { %v1892_v56 = vpop.eup %1891  ;;  %v672_v59 = vadd.f32 1.0, %v1890_v55  ;;  %1903 = vtanh.f32 %v643_v53  ;;  %v1681_v60 = vpop.f32.mrb[8].mxu0 }
 0x194   : > { %v1894_v61 = vpop.eup %1893  ;;  %v670_v62 = vadd.f32 1.0, %v1892_v56  ;;  %v616_v63 = vadd.f32 %v1681_v60, %v2471_v25  ;;  %v607_v0 = vpop.f32.mrb[9].mxu0 }
 0x195   : > { %v1896_v3 = vpop.eup %1895  ;;  %v673_v5 = vadd.f32 1.0, %v1894_v61  ;;  %v608_v6 = vadd.f32 %v2471_v25, %v607_v0  ;;  %v1682_v7 = vpop.f32.mrb[10].mxu0  ;;  %v2506_v22 = vmul.f32 0.5, %v672_v59  ;;  %v708_v61 = vmul.f32 %v2485_v54, %v411_v31 }
 0x196   : > { %v671_v17 = vadd.f32 1.0, %v1896_v3  ;;  %v648_v18 = vmul.f32 0.5, %v616_v63  ;;  %v619_v19 = vadd.f32 %v1682_v7, %v2471_v25  ;;  %v610_v20 = vpop.f32.mrb[11].mxu0  ;;  %v2504_v21 = vmul.f32 0.5, %v670_v62 }
 0x197   : > { %v2508_v23 = vmul.f32 0.5, %v673_v5  ;;  %v646_v26 = vmul.f32 0.5, %v608_v6  ;;  %v611_v27 = vadd.f32 %v2471_v25, %v610_v20  ;;  %v721_v41 = vadd.f32 %v705_v2, %v2506_v22 }
 0x198   : > { %1905 = vtanh.f32 %v648_v18  ;;  %v649_v29 = vmul.f32 0.5, %v619_v19  ;;  %v2512_v30 = vmul.f32 0.5, %v671_v17  ;;  %v719_v35 = vadd.f32 %v703_v1, %v2504_v21 }
 0x199   : > { %1907 = vtanh.f32 %v646_v26  ;;  %v647_v32 = vmul.f32 0.5, %v611_v27  ;;  %v722_v42 = vadd.f32 %v706_v9, %v2508_v23  ;;  %v414_v18 = vunpack.c.l.bf16 %v2447_v13 }
 0x19a   : > { %v1898_v34 = vpop.eup %1897  ;;  %1909 = vtanh.f32 %v649_v29  ;;  %v720_v36 = vadd.f32 %v704_v8, %v2512_v30  ;;  %v416_v8 = vunpack.c.l.bf16 %v2452_v14  ;;  %v417_v19 = vunpack.c.h.bf16 %v2452_v14 }
 0x19b   : > { %v1900_v38 = vpop.eup %1899  ;;  %v676_v39 = vadd.f32 1.0, %v1898_v34  ;;  %1911 = vtanh.f32 %v647_v32  ;;  %v1685_v40 = vpop.f32.mrb[12].mxu0  ;;  %v736_v60 = vpack.c.bf16 %v722_v42, %v721_v41  ;;  %v415_v27 = vunpack.c.h.bf16 %v2447_v13 }
 0x19c   : > { %v1902_v43 = vpop.eup %1901  ;;  %v674_v44 = vadd.f32 1.0, %v1900_v38  ;;  %v632_v45 = vadd.f32 %v1685_v40, %v2471_v25  ;;  %v623_v47 = vpop.f32.mrb[13].mxu0  ;;  %v735_v48 = vpack.c.bf16 %v720_v36, %v719_v35  ;;  %v713_v40 = vmul.f32 %v2485_v54, %v416_v8 }
 0x19d   : > { %v1904_v53 = vpop.eup %1903  ;;  %v677_v55 = vadd.f32 1.0, %v1902_v43  ;;  %v624_v56 = vadd.f32 %v2471_v25, %v623_v47  ;;  %v1686_v59 = vpop.f32.mrb[14].mxu0  ;;  %v2536_v3 = vmul.f32 0.5, %v676_v39  ;;  %v711_v47 = vmul.f32 %v2485_v54, %v414_v18 }
 0x19e   : > { %v2533_v62 = vmul.f32 0.5, %v674_v44  ;;  %v675_v63 = vadd.f32 1.0, %v1904_v53  ;;  %v652_v0 = vmul.f32 0.5, %v632_v45  ;;  %v635_v1 = vadd.f32 %v1686_v59, %v2471_v25  ;;  %v626_v2 = vpop.f32.mrb[15].mxu0  ;;  %1703 = vmatprep.mubr.bf16.mxu1 %v735_v48 }
 0x19f   : > { %v2538_v5 = vmul.f32 0.5, %v677_v55  ;;  %v650_v6 = vmul.f32 0.5, %v624_v56  ;;  %v627_v7 = vadd.f32 %v2471_v25, %v626_v2  ;;  %1704 = vmatmul.mubr.bf16.vlgmr.msra.gmra.mrb[0].mxu1 %v736_v60  ;;  %v725_v35 = vadd.f32 %v709_v33, %v2536_v3 }
 0x1a0   : > { %v2542_v9 = vmul.f32 0.5, %v675_v63  ;;  %1913 = vtanh.f32 %v652_v0  ;;  %v653_v17 = vmul.f32 0.5, %v635_v1  ;;  %1759 = vmatpush3.bf16.msra.mxu1 %v2463_v24  ;;  %v723_v25 = vadd.f32 %v707_v37, %v2533_v62 }
 0x1a1   : > { %1915 = vtanh.f32 %v650_v6  ;;  %v651_v20 = vmul.f32 0.5, %v627_v7  ;;  %v726_v24 = vadd.f32 %v710_v51, %v2538_v5  ;;  %v714_v44 = vmul.f32 %v2485_v54, %v417_v19 }
 0x1a2   : > { %v1906_v26 = vpop.eup %1905  ;;  %1917 = vtanh.f32 %v653_v17  ;;  %v724_v29 = vadd.f32 %v708_v61, %v2542_v9  ;;  %v712_v48 = vmul.f32 %v2485_v54, %v415_v27  ;;  %v420_v55 = vunpack.c.l.bf16 %v2460_v16 }
 0x1a3   : > { %v1908_v32 = vpop.eup %1907  ;;  %v680_v34 = vadd.f32 1.0, %v1906_v26  ;;  %1919 = vtanh.f32 %v651_v20  ;;  %v738_v43 = vpack.c.bf16 %v726_v24, %v725_v35  ;;  %v421_v56 = vunpack.c.h.bf16 %v2460_v16 }
 0x1a4   : > { %v1910_v36 = vpop.eup %1909  ;;  %v678_v38 = vadd.f32 1.0, %v1908_v32  ;;  %v737_v39 = vpack.c.bf16 %v724_v29, %v723_v25  ;;  %v418_v63 = vunpack.c.l.bf16 %v2455_v15  ;;  %v419_v0 = vunpack.c.h.bf16 %v2455_v15 }
 0x1a5   : > { %v1912_v41 = vpop.eup %1911  ;;  %v2555_v42 = vmul.f32 0.5, %v680_v34  ;;  %v681_v37 = vadd.f32 1.0, %v1910_v36  ;;  %v717_v35 = vmul.f32 %v2485_v54, %v420_v55  ;;  %v718_v24 = vmul.f32 %v2485_v54, %v421_v56 }
 0x1a6   : > { %v2560_v45 = vmul.f32 0.5, %v678_v38  ;;  %v679_v33 = vadd.f32 1.0, %v1912_v41  ;;  %1707 = vmatprep.mubr.bf16.mxu1 %v737_v39  ;;  %v715_v39 = vmul.f32 %v2485_v54, %v418_v63 }
 0x1a7   : > { %v2568_v51 = vmul.f32 0.5, %v681_v37  ;;  %1708 = vmatmul.mubr.bf16.gmra.mrb[4].mxu1 %v738_v43  ;;  %v729_v59 = vadd.f32 %v713_v40, %v2555_v42  ;;  %v716_v40 = vmul.f32 %v2485_v54, %v419_v0  ;;  %v1875_v54 = vld [vmem:[#allocation9 + $0x10] sm:$0xff]  }
 0x1a8   : > { %v2570_v53 = vmul.f32 0.5, %v679_v33  ;;  %v727_v1 = vadd.f32 %v711_v47, %v2560_v45 }
 0x1a9   : > { %v730_v60 = vadd.f32 %v714_v44, %v2568_v51 }
 0x1aa   : > { %v1914_v61 = vpop.eup %1913  ;;  %v728_v2 = vadd.f32 %v712_v48, %v2570_v53 }
 0x1ab   : > { %v1916_v6 = vpop.eup %1915  ;;  %v684_v7 = vadd.f32 1.0, %v1914_v61  ;;  %v740_v17 = vpack.c.bf16 %v730_v60, %v729_v59  ;;  %v1874_v60 = vld [vmem:[#allocation9 + $0x8] sm:$0xff]   ;;  %v1876_v61 = vld [vmem:[#allocation9 + $0x18] sm:$0xff]  }
 0x1ac   : > { %v1918_v20 = vpop.eup %1917  ;;  %v682_v26 = vadd.f32 1.0, %v1916_v6  ;;  %v739_v25 = vpack.c.bf16 %v728_v2, %v727_v1  ;;  %1721 = vmatprep.subr.bf16.mxu0 %v1874_v60  ;;  %1752 = vmatprep.subr.bf16.mxu1 %v1874_v60  ;;  %v1877_v1 = vld [vmem:[#allocation9 + $0x20] sm:$0xff]   ;;  %v1878_v2 = vld [vmem:[#allocation9 + $0x28] sm:$0xff]   ;;  %v1879_v6 = vld [vmem:[#allocation9 + $0x30] sm:$0xff]  }
 0x1ad   : > { %v1920_v29 = vpop.eup %1919  ;;  %v2580_v32 = vmul.f32 0.5, %v684_v7  ;;  %v685_v34 = vadd.f32 1.0, %v1918_v20  ;;  %1722 = vmatpush3.bf16.msra.mxu0 %v1874_v60  ;;  %1760 = vmatpush3.bf16.msra.mxu1 %v1874_v60  ;;  %v1880_v7 = vld [vmem:[#allocation9 + $0x38] sm:$0xff]  }
 0x1ae   : > { %v2588_v36 = vmul.f32 0.5, %v682_v26  ;;  %v683_v38 = vadd.f32 1.0, %v1920_v29  ;;  %1711 = vmatprep.mubr.bf16.mxu1 %v739_v25  ;;  %1723 = vmatprep.subr.bf16.mxu0 %v1875_v54 }
 0x1af   : > { %v2596_v41 = vmul.f32 0.5, %v685_v34  ;;  %1712 = vmatmul.mubr.bf16.gmra.mrb[8].mxu1 %v740_v17  ;;  %v733_v43 = vadd.f32 %v717_v35, %v2580_v32  ;;  %1753 = vmatprep.subr.bf16.mxu1 %v1875_v54  ;;  %v2607_v17 = vld [vmem:[%s2781_s5] ss:$0 sm:$0xff] }
 0x1b0   : > { %v2598_v37 = vmul.f32 0.5, %v683_v38  ;;  %v731_v33 = vadd.f32 %v715_v39, %v2588_v36 }
 0x1b1   : > { %v734_v44 = vadd.f32 %v718_v24, %v2596_v41  ;;  %1724 = vmatpush3.bf16.msra.mxu0 %v1875_v54  ;;  %1761 = vmatpush3.bf16.msra.mxu1 %v1875_v54 }
 0x1b2   : > { %v732_v47 = vadd.f32 %v716_v40, %v2598_v37  ;;  %1725 = vmatprep.subr.bf16.mxu0 %v1876_v61  ;;  %1754 = vmatprep.subr.bf16.mxu1 %v1876_v61 }
 0x1b3   : > { %v742_v48 = vpack.c.bf16 %v734_v44, %v733_v43 }
 0x1b4   : > { %v741_v59 = vpack.c.bf16 %v732_v47, %v731_v33  ;;  %v2613_v47 = vstv %s1488_s23 }
 0x1b5   : > { %1726 = vmatpush3.bf16.msra.mxu0 %v1876_v61  ;;  %1762 = vmatpush3.bf16.msra.mxu1 %v1876_v61  ;;  %v2636_v4 = vmul.f32 %v2613_v47, %v410_v57  ;;  %v2651_v10 = vmul.f32 %v2613_v47, %v413_v28 }
 0x1b6   : > { %1715 = vmatprep.mubr.bf16.mxu1 %v741_v59  ;;  %1727 = vmatprep.subr.bf16.mxu0 %v1877_v1 }
 0x1b7   : > { %1716 = vmatmul.mubr.bf16.gmra.mrb[12].mxu1 %v742_v48  ;;  %1755 = vmatprep.subr.bf16.mxu1 %v1877_v1 }
 0x1b9   : > { %1728 = vmatpush3.bf16.msra.mxu0 %v1877_v1  ;;  %1763 = vmatpush3.bf16.msra.mxu1 %v1877_v1 }
 0x1ba   : > { %1729 = vmatprep.subr.bf16.mxu0 %v1878_v2  ;;  %1756 = vmatprep.subr.bf16.mxu1 %v1878_v2 }
 0x1bd   : > { %1730 = vmatpush3.bf16.msra.mxu0 %v1878_v2  ;;  %1764 = vmatpush3.bf16.msra.mxu1 %v1878_v2 }
 0x1be   : > { %1731 = vmatprep.subr.bf16.mxu0 %v1879_v6  ;;  %1757 = vmatprep.subr.bf16.mxu1 %v1879_v6 }
 0x1c1   : > { %1732 = vmatpush3.bf16.msra.mxu0 %v1879_v6  ;;  %1765 = vmatpush3.bf16.msra.mxu1 %v1879_v6  ;;  %v976_v6 = vmul.f32 %v2613_v47, %v406_v46 }
 0x1c2   : > { %1733 = vmatprep.subr.bf16.mxu0 %v1880_v7  ;;  %1758 = vmatprep.subr.bf16.mxu1 %v1880_v7 }
 0x1c5   : > { %1734 = vmatpush3.bf16.msra.mxu0 %v1880_v7  ;;  %1766 = vmatpush3.bf16.msra.mxu1 %v1880_v7  ;;  %v977_v7 = vmul.f32 %v2613_v47, %v407_v49 }
 0x272   : > { %v1705_v20 = vpop.f32.mrb[0].mxu1 }
 0x273   : > { %v857_v26 = vadd.f32 %v1705_v20, %v2607_v17  ;;  %v848_v25 = vpop.f32.mrb[1].mxu1 }
 0x274   : > { %v849_v29 = vadd.f32 %v2607_v17, %v848_v25  ;;  %v1706_v34 = vpop.f32.mrb[2].mxu1  ;;  %v978_v25 = vmul.f32 %v2613_v47, %v408_v50  ;;  %v2641_v50 = vmul.f32 %v2613_v47, %v411_v31 }
 0x275   : > { %v913_v35 = vmul.f32 0.5, %v857_v26  ;;  %v860_v24 = vadd.f32 %v1706_v34, %v2607_v17  ;;  %v851_v38 = vpop.f32.mrb[3].mxu1 }
 0x276   : > { %v911_v39 = vmul.f32 0.5, %v849_v29  ;;  %v852_v40 = vadd.f32 %v2607_v17, %v851_v38  ;;  %v2628_v29 = vstv %s1489_s20 }
 0x277   : > { %1921 = vtanh.f32 %v913_v35  ;;  %v914_v43 = vmul.f32 0.5, %v860_v24  ;;  %v979_v35 = vmul.f32 %v2613_v47, %v409_v52  ;;  %v2646_v24 = vmul.f32 %v2613_v47, %v412_v58 }
 0x278   : > { %1923 = vtanh.f32 %v911_v39  ;;  %v912_v44 = vmul.f32 0.5, %v852_v40  ;;  %v1011_v57 = vmul.f32 %v2628_v29, %v2506_v22  ;;  %v1012_v11 = vmul.f32 %v2628_v29, %v2508_v23 }
 0x279   : > { %1925 = vtanh.f32 %v914_v43  ;;  %v1009_v58 = vmul.f32 %v2628_v29, %v2504_v21  ;;  %v1010_v12 = vmul.f32 %v2628_v29, %v2512_v30  ;;  %v2664_v22 = vmul.f32 %v2628_v29, %v2536_v3 }
 0x27a   : > { %1927 = vtanh.f32 %v912_v44  ;;  %v1709_v33 = vpop.f32.mrb[4].mxu1  ;;  %v1017_v14 = vmul.f32 %v2628_v29, %v2560_v45  ;;  %v1021_v16 = vmul.f32 %v2628_v29, %v2588_v36  ;;  %v2727_v36 = vld [vmem:[%s2783_s7] ss:$0 sm:$0xff] }
 0x27b   : > { %v873_v48 = vadd.f32 %v1709_v33, %v2607_v17  ;;  %v864_v59 = vpop.f32.mrb[5].mxu1 }
 0x27c   : > { %v865_v60 = vadd.f32 %v2607_v17, %v864_v59  ;;  %v1710_v54 = vpop.f32.mrb[6].mxu1 }
 0x27d   : > { %v917_v61 = vmul.f32 0.5, %v873_v48  ;;  %v876_v1 = vadd.f32 %v1710_v54, %v2607_v17  ;;  %v867_v2 = vpop.f32.mrb[7].mxu1 }
 0x27e   : > { %v915_v20 = vmul.f32 0.5, %v865_v60  ;;  %v868_v26 = vadd.f32 %v2607_v17, %v867_v2 }
 0x27f   : > { %1929 = vtanh.f32 %v917_v61  ;;  %v918_v34 = vmul.f32 0.5, %v876_v1 }
 0x280   : > { %1931 = vtanh.f32 %v915_v20  ;;  %v916_v46 = vmul.f32 0.5, %v868_v26 }
 0x281   : > { %v1922_v49 = vpop.eup %1921  ;;  %1933 = vtanh.f32 %v918_v34 }
 0x282   : > { %v1924_v52 = vpop.eup %1923  ;;  %v945_v31 = vadd.f32 1.0, %v1922_v49  ;;  %1935 = vtanh.f32 %v916_v46  ;;  %v1713_v38 = vpop.f32.mrb[8].mxu1 }
 0x283   : > { %v1926_v39 = vpop.eup %1925  ;;  %v943_v28 = vadd.f32 1.0, %v1924_v52  ;;  %v889_v40 = vadd.f32 %v1713_v38, %v2607_v17  ;;  %v880_v43 = vpop.f32.mrb[9].mxu1 }
 0x284   : > { %v1928_v44 = vpop.eup %1927  ;;  %v961_v23 = vmul.f32 0.5, %v945_v31  ;;  %v946_v33 = vadd.f32 1.0, %v1926_v39  ;;  %v881_v48 = vadd.f32 %v2607_v17, %v880_v43  ;;  %v1714_v59 = vpop.f32.mrb[10].mxu1  ;;  %v1013_v39 = vmul.f32 %v2628_v29, %v2533_v62 }
 0x285   : > { %v959_v60 = vmul.f32 0.5, %v943_v28  ;;  %v944_v54 = vadd.f32 1.0, %v1928_v44  ;;  %v921_v21 = vmul.f32 0.5, %v889_v40  ;;  %v892_v61 = vadd.f32 %v1714_v59, %v2607_v17  ;;  %v883_v30 = vpop.f32.mrb[11].mxu1 }
 0x286   : > { %v994_v1 = vadd.f32 %v978_v25, %v961_v23  ;;  %v962_v2 = vmul.f32 0.5, %v946_v33  ;;  %v919_v20 = vmul.f32 0.5, %v881_v48  ;;  %v884_v26 = vadd.f32 %v2607_v17, %v883_v30 }
 0x287   : > { %v992_v34 = vadd.f32 %v976_v6, %v959_v60  ;;  %v960_v46 = vmul.f32 0.5, %v944_v54  ;;  %1937 = vtanh.f32 %v921_v21  ;;  %v922_v3 = vmul.f32 0.5, %v892_v61 }
 0x288   : > { %v1027_v49 = vadd.f32 %v1011_v57, %v994_v1  ;;  %v995_v52 = vadd.f32 %v979_v35, %v962_v2  ;;  %1939 = vtanh.f32 %v919_v20  ;;  %v920_v31 = vmul.f32 0.5, %v884_v26 }
 0x289   : > { %v1930_v38 = vpop.eup %1929  ;;  %v993_v28 = vadd.f32 %v977_v7, %v960_v46  ;;  %1941 = vtanh.f32 %v922_v3  ;;  %v1025_v40 = vadd.f32 %v1009_v58, %v992_v34  ;;  %v1016_v43 = vmul.f32 %v2628_v29, %v2538_v5 }
 0x28a   : > { %v1932_v25 = vpop.eup %1931  ;;  %v1028_v44 = vadd.f32 %v1012_v11, %v995_v52  ;;  %v949_v6 = vadd.f32 1.0, %v1930_v38  ;;  %1943 = vtanh.f32 %v920_v31  ;;  %v1717_v23 = vpop.f32.mrb[12].mxu1  ;;  %v1014_v35 = vmul.f32 %v2628_v29, %v2542_v9 }
 0x28b   : > { %v1934_v33 = vpop.eup %1933  ;;  %v947_v57 = vadd.f32 1.0, %v1932_v25  ;;  %v905_v48 = vadd.f32 %v1717_v23, %v2607_v17  ;;  %v896_v59 = vpop.f32.mrb[13].mxu1  ;;  %v1026_v62 = vadd.f32 %v1010_v12, %v993_v28 }
 0x28c   : > { %v1936_v7 = vpop.eup %1935  ;;  %v1042_v60 = vpack.c.bf16 %v1028_v44, %v1027_v49  ;;  %v965_v58 = vmul.f32 0.5, %v949_v6  ;;  %v950_v54 = vadd.f32 1.0, %v1934_v33  ;;  %v897_v21 = vadd.f32 %v2607_v17, %v896_v59  ;;  %v1718_v5 = vpop.f32.mrb[14].mxu1 }
 0x28d   : > { %v963_v11 = vmul.f32 0.5, %v947_v57  ;;  %v948_v61 = vadd.f32 1.0, %v1936_v7  ;;  %v925_v30 = vmul.f32 0.5, %v905_v48  ;;  %v908_v1 = vadd.f32 %v1718_v5, %v2607_v17  ;;  %v899_v2 = vpop.f32.mrb[15].mxu1 }
 0x28e   : > { %v998_v9 = vadd.f32 %v2646_v24, %v965_v58  ;;  %v966_v20 = vmul.f32 0.5, %v950_v54  ;;  %v923_v26 = vmul.f32 0.5, %v897_v21  ;;  %v900_v34 = vadd.f32 %v2607_v17, %v899_v2 }
 0x28f   : > { %v996_v12 = vadd.f32 %v2636_v4, %v963_v11  ;;  %v964_v46 = vmul.f32 0.5, %v948_v61  ;;  %1945 = vtanh.f32 %v925_v30  ;;  %v926_v3 = vmul.f32 0.5, %v908_v1 }
 0x290   : > { %v999_v49 = vadd.f32 %v2651_v10, %v966_v20  ;;  %1947 = vtanh.f32 %v923_v26  ;;  %v924_v52 = vmul.f32 0.5, %v900_v34  ;;  %v1041_v31 = vpack.c.bf16 %v1026_v62, %v1025_v40 }
 0x291   : > { %v1938_v38 = vpop.eup %1937  ;;  %v997_v28 = vadd.f32 %v2641_v50, %v964_v46  ;;  %1949 = vtanh.f32 %v926_v3  ;;  %v1029_v25 = vadd.f32 %v1013_v39, %v996_v12  ;;  %v1031_v24 = vadd.f32 %v2664_v22, %v998_v9 }
 0x292   : > { %v1940_v44 = vpop.eup %1939  ;;  %v986_v17 = vmul.f32 %v2613_v47, %v416_v8  ;;  %v953_v4 = vadd.f32 1.0, %v1938_v38  ;;  %1951 = vtanh.f32 %v924_v52  ;;  %1735 = vmatprep.mubr.bf16.mxu0 %v1041_v31  ;;  %v1032_v6 = vadd.f32 %v1016_v43, %v999_v49 }
 0x293   : > { %v1942_v10 = vpop.eup %1941  ;;  %v984_v40 = vmul.f32 %v2613_v47, %v414_v18  ;;  %v951_v23 = vadd.f32 1.0, %v1940_v44  ;;  %1736 = vmatmul.mubr.bf16.vlgmr.msra.gmra.mrb[16].mxu0 %v1042_v60  ;;  %v1030_v50 = vadd.f32 %v1014_v35, %v997_v28  ;;  %v987_v22 = vmul.f32 %v2613_v47, %v417_v19 }
 0x294   : > { %v1944_v39 = vpop.eup %1943  ;;  %v969_v33 = vmul.f32 0.5, %v953_v4  ;;  %v954_v57 = vadd.f32 1.0, %v1942_v10  ;;  %v1044_v8 = vpack.c.bf16 %v1032_v6, %v1031_v24  ;;  %v985_v43 = vmul.f32 %v2613_v47, %v415_v27 }
 0x295   : > { %v967_v48 = vmul.f32 0.5, %v951_v23  ;;  %v952_v59 = vadd.f32 1.0, %v1944_v39  ;;  %v1043_v62 = vpack.c.bf16 %v1030_v50, %v1029_v25  ;;  %v1019_v18 = vmul.f32 %v2628_v29, %v2555_v42 }
 0x296   : > { %v1002_v7 = vadd.f32 %v986_v17, %v969_v33  ;;  %v970_v35 = vmul.f32 0.5, %v954_v57  ;;  %v1020_v58 = vmul.f32 %v2628_v29, %v2568_v51  ;;  %v1018_v21 = vmul.f32 %v2628_v29, %v2570_v53 }
 0x297   : > { %v1000_v60 = vadd.f32 %v984_v40, %v967_v48  ;;  %v968_v19 = vmul.f32 0.5, %v952_v59  ;;  %1739 = vmatprep.mubr.bf16.mxu0 %v1043_v62  ;;  %v990_v61 = vmul.f32 %v2613_v47, %v420_v55  ;;  %v988_v51 = vmul.f32 %v2613_v47, %v418_v63 }
 0x298   : > { %v1035_v13 = vadd.f32 %v1019_v18, %v1002_v7  ;;  %v1003_v54 = vadd.f32 %v987_v22, %v970_v35  ;;  %v991_v53 = vmul.f32 %v2613_v47, %v421_v56  ;;  %v989_v55 = vmul.f32 %v2613_v47, %v419_v0 }
 0x299   : > { %v1946_v27 = vpop.eup %1945  ;;  %v1001_v5 = vadd.f32 %v985_v43, %v968_v19  ;;  %v1033_v11 = vadd.f32 %v1017_v14, %v1000_v60  ;;  %v1023_v63 = vmul.f32 %v2628_v29, %v2580_v32  ;;  %v1024_v28 = vmul.f32 %v2628_v29, %v2596_v41 }
 0x29a   : > { %v1948_v42 = vpop.eup %1947  ;;  %v1036_v45 = vadd.f32 %v1020_v58, %v1003_v54  ;;  %v957_v30 = vadd.f32 1.0, %v1946_v27  ;;  %v1022_v47 = vmul.f32 %v2628_v29, %v2598_v37 }
 0x29b   : > { %v1950_v1 = vpop.eup %1949  ;;  %v955_v2 = vadd.f32 1.0, %v1948_v42  ;;  %1740 = vmatmul.mubr.bf16.gmra.mrb[20].mxu0 %v1044_v8  ;;  %v1034_v9 = vadd.f32 %v1018_v21, %v1001_v5 }
 0x29c   : > { %v1952_v20 = vpop.eup %1951  ;;  %v1046_v26 = vpack.c.bf16 %v1036_v45, %v1035_v13  ;;  %v973_v34 = vmul.f32 0.5, %v957_v30  ;;  %v958_v12 = vadd.f32 1.0, %v1950_v1 }
 0x29d   : > { %v971_v46 = vmul.f32 0.5, %v955_v2  ;;  %v956_v3 = vadd.f32 1.0, %v1952_v20  ;;  %v1045_v49 = vpack.c.bf16 %v1034_v9, %v1033_v11 }
 0x29e   : > { %v1006_v52 = vadd.f32 %v990_v61, %v973_v34  ;;  %v974_v31 = vmul.f32 0.5, %v958_v12 }
 0x29f   : > { %v1004_v38 = vadd.f32 %v988_v51, %v971_v46  ;;  %v972_v56 = vmul.f32 0.5, %v956_v3  ;;  %1743 = vmatprep.mubr.bf16.mxu1 %v1045_v49 }
 0x2a0   : > { %v1007_v15 = vadd.f32 %v991_v53, %v974_v31  ;;  %1744 = vmatmul.mubr.bf16.vlgmr.msra.gmra.mrb[16].mxu1 %v1046_v26  ;;  %v1039_v0 = vadd.f32 %v1023_v63, %v1006_v52 }
 0x2a1   : > { %v1005_v25 = vadd.f32 %v989_v55, %v972_v56  ;;  %v1037_v24 = vadd.f32 %v1021_v16, %v1004_v38 }
 0x2a2   : > { %v1040_v32 = vadd.f32 %v1024_v28, %v1007_v15 }
 0x2a3   : > { %v1038_v44 = vadd.f32 %v1022_v47, %v1005_v25 }
 0x2a4   : > { %v1048_v17 = vpack.c.bf16 %v1040_v32, %v1039_v0 }
 0x2a5   : > { %v1047_v4 = vpack.c.bf16 %v1038_v44, %v1037_v24 }
 0x2a7   : > { %1747 = vmatprep.mubr.bf16.mxu1 %v1047_v4 }
 0x2a8   : > { %1748 = vmatmul.mubr.bf16.gmra.mrb[20].mxu1 %v1048_v17 }
 0x366   : > { %v1737_v41 = vpop.f32.mrb[16].mxu0 }
 0x367   : > { %v1163_v6 = vadd.f32 %v1737_v41, %v2727_v36  ;;  %v1154_v10 = vpop.f32.mrb[17].mxu0 }
 0x368   : > { %v1155_v37 = vadd.f32 %v2727_v36, %v1154_v10  ;;  %v1738_v29 = vpop.f32.mrb[18].mxu0 }
 0x369   : > { %v1219_v40 = vmul.f32 0.5, %v1163_v6  ;;  %v1166_v23 = vadd.f32 %v1738_v29, %v2727_v36  ;;  %v1157_v50 = vpop.f32.mrb[19].mxu0 }
 0x36a   : > { %v1217_v39 = vmul.f32 0.5, %v1155_v37  ;;  %v1158_v22 = vadd.f32 %v2727_v36, %v1157_v50 }
 0x36b   : > { %1953 = vtanh.f32 %v1219_v40  ;;  %v1220_v33 = vmul.f32 0.5, %v1166_v23 }
 0x36c   : > { %1955 = vtanh.f32 %v1217_v39  ;;  %v1218_v57 = vmul.f32 0.5, %v1158_v22 }
 0x36d   : > { %1957 = vtanh.f32 %v1220_v33 }
 0x36e   : > { %1959 = vtanh.f32 %v1218_v57  ;;  %v1741_v8 = vpop.f32.mrb[20].mxu0 }
 0x36f   : > { %v1179_v43 = vadd.f32 %v1741_v8, %v2727_v36  ;;  %v1170_v48 = vpop.f32.mrb[21].mxu0 }
 0x370   : > { %v1171_v59 = vadd.f32 %v2727_v36, %v1170_v48  ;;  %v1742_v62 = vpop.f32.mrb[22].mxu0 }
 0x371   : > { %v1223_v18 = vmul.f32 0.5, %v1179_v43  ;;  %v1182_v7 = vadd.f32 %v1742_v62, %v2727_v36  ;;  %v1173_v35 = vpop.f32.mrb[23].mxu0 }
 0x372   : > { %v1221_v14 = vmul.f32 0.5, %v1171_v59  ;;  %v1174_v60 = vadd.f32 %v2727_v36, %v1173_v35 }
 0x373   : > { %1961 = vtanh.f32 %v1223_v18  ;;  %v1224_v19 = vmul.f32 0.5, %v1182_v7  ;;  %v1745_v58 = vpop.f32.mrb[16].mxu1 }
 0x374   : > { %1963 = vtanh.f32 %v1221_v14  ;;  %v1222_v13 = vmul.f32 0.5, %v1174_v60  ;;  %v1195_v54 = vadd.f32 %v1745_v58, %v2727_v36  ;;  %v1186_v27 = vpop.f32.mrb[17].mxu1 }
 0x375   : > { %v1954_v21 = vpop.eup %1953  ;;  %1965 = vtanh.f32 %v1224_v19  ;;  %v1187_v5 = vadd.f32 %v2727_v36, %v1186_v27  ;;  %v1746_v11 = vpop.f32.mrb[18].mxu1 }
 0x376   : > { %v1956_v42 = vpop.eup %1955  ;;  %v1251_v61 = vadd.f32 1.0, %v1954_v21  ;;  %1967 = vtanh.f32 %v1222_v13  ;;  %v1227_v45 = vmul.f32 0.5, %v1195_v54  ;;  %v1198_v30 = vadd.f32 %v1746_v11, %v2727_v36  ;;  %v1189_v1 = vpop.f32.mrb[19].mxu1 }
 0x377   : > { %v1958_v51 = vpop.eup %1957  ;;  %v1249_v2 = vadd.f32 1.0, %v1956_v42  ;;  %v1225_v9 = vmul.f32 0.5, %v1187_v5  ;;  %v1190_v20 = vadd.f32 %v2727_v36, %v1189_v1 }
 0x378   : > { %v1960_v53 = vpop.eup %1959  ;;  %v1252_v26 = vadd.f32 1.0, %v1958_v51  ;;  %1969 = vtanh.f32 %v1227_v45  ;;  %v1228_v34 = vmul.f32 0.5, %v1198_v30  ;;  %v1267_v46 = vmul.f32 0.5, %v1251_v61 }
 0x379   : > { %v1250_v12 = vadd.f32 1.0, %v1960_v53  ;;  %1971 = vtanh.f32 %v1225_v9  ;;  %v1226_v55 = vmul.f32 0.5, %v1190_v20  ;;  %v1265_v49 = vmul.f32 0.5, %v1249_v2 }
 0x37a   : > { %v1268_v3 = vmul.f32 0.5, %v1252_v26  ;;  %1973 = vtanh.f32 %v1228_v34 }
 0x37b   : > { %v1266_v63 = vmul.f32 0.5, %v1250_v12  ;;  %1975 = vtanh.f32 %v1226_v55  ;;  %v1749_v52 = vpop.f32.mrb[20].mxu1 }
 0x37c   : > { %v1568_v31 = vpack.c.bf16 %v1268_v3, %v1267_v46  ;;  %v1211_v16 = vadd.f32 %v1749_v52, %v2727_v36  ;;  %v1202_v38 = vpop.f32.mrb[21].mxu1 }
 0x37d   : > { %v1962_v56 = vpop.eup %1961  ;;  %v1563_v28 = vpack.c.bf16 %v1266_v63, %v1265_v49  ;;  %v1203_v15 = vadd.f32 %v2727_v36, %v1202_v38  ;;  %v1750_v0 = vpop.f32.mrb[22].mxu1 }
 0x37e   : > { %v1964_v47 = vpop.eup %1963  ;;  %1600 = vst [vmem:[%s2749_s18 + $0x8] sm:$0xff] %v1568_v31   ;;  %v1255_v25 = vadd.f32 1.0, %v1962_v56  ;;  %v1231_v24 = vmul.f32 0.5, %v1211_v16  ;;  %v1214_v32 = vadd.f32 %v1750_v0, %v2727_v36  ;;  %v1205_v44 = vpop.f32.mrb[23].mxu1 }
 0x37f   : > { %v1966_v17 = vpop.eup %1965  ;;  %1564 = vst [vmem:[%s2749_s18] sm:$0xff] %v1563_v28   ;;  %v1253_v4 = vadd.f32 1.0, %v1964_v47  ;;  %v1229_v41 = vmul.f32 0.5, %v1203_v15  ;;  %v1206_v6 = vadd.f32 %v2727_v36, %v1205_v44 }
 0x380   : > { %v1968_v10 = vpop.eup %1967  ;;  %v1256_v37 = vadd.f32 1.0, %v1966_v17  ;;  %1977 = vtanh.f32 %v1231_v24  ;;  %v1232_v29 = vmul.f32 0.5, %v1214_v32  ;;  %v1271_v39 = vmul.f32 0.5, %v1255_v25 }
 0x381   : > { %v1254_v40 = vadd.f32 1.0, %v1968_v10  ;;  %1979 = vtanh.f32 %v1229_v41  ;;  %v1230_v23 = vmul.f32 0.5, %v1206_v6  ;;  %v1269_v57 = vmul.f32 0.5, %v1253_v4 }
 0x382   : > { %v1970_v50 = vpop.eup %1969  ;;  %v1272_v22 = vmul.f32 0.5, %v1256_v37  ;;  %1981 = vtanh.f32 %v1232_v29 }
 0x383   : > { %v1972_v33 = vpop.eup %1971  ;;  %v1270_v8 = vmul.f32 0.5, %v1254_v40  ;;  %v1259_v43 = vadd.f32 1.0, %v1970_v50  ;;  %1983 = vtanh.f32 %v1230_v23 }
 0x384   : > { %v1974_v48 = vpop.eup %1973  ;;  %v1578_v36 = vpack.c.bf16 %v1272_v22, %v1271_v39  ;;  %v1257_v59 = vadd.f32 1.0, %v1972_v33 }
 0x385   : > { %v1976_v62 = vpop.eup %1975  ;;  %v1573_v18 = vpack.c.bf16 %v1270_v8, %v1269_v57  ;;  %v1260_v7 = vadd.f32 1.0, %v1974_v48  ;;  %v1275_v14 = vmul.f32 0.5, %v1259_v43 }
 0x386   : > { %1602 = vst [vmem:[%s2749_s18 + $0x18] sm:$0xff] %v1578_v36   ;;  %v1258_v35 = vadd.f32 1.0, %v1976_v62  ;;  %v1273_v19 = vmul.f32 0.5, %v1257_v59 }
 0x387   : > { %1601 = vst [vmem:[%s2749_s18 + $0x10] sm:$0xff] %v1573_v18   ;;  %v1276_v60 = vmul.f32 0.5, %v1260_v7 }
 0x388   : > { %v1274_v58 = vmul.f32 0.5, %v1258_v35 }
 0x389   : > { %v1588_v13 = vpack.c.bf16 %v1276_v60, %v1275_v14 }
 0x38a   : > { %v1978_v54 = vpop.eup %1977  ;;  %v1583_v27 = vpack.c.bf16 %v1274_v58, %v1273_v19 }
 0x38b   : > { %v1980_v21 = vpop.eup %1979  ;;  %1604 = vst [vmem:[%s2749_s18 + $0x28] sm:$0xff] %v1588_v13   ;;  %v1263_v5 = vadd.f32 1.0, %v1978_v54 }
 0x38c   : > { %v1982_v11 = vpop.eup %1981  ;;  %1603 = vst [vmem:[%s2749_s18 + $0x20] sm:$0xff] %v1583_v27   ;;  %v1261_v42 = vadd.f32 1.0, %v1980_v21 }
 0x38d   : > { %v1984_v61 = vpop.eup %1983  ;;  %v1264_v45 = vadd.f32 1.0, %v1982_v11  ;;  %v1279_v1 = vmul.f32 0.5, %v1263_v5 }
 0x38e   : > { %v1262_v30 = vadd.f32 1.0, %v1984_v61  ;;  %v1277_v2 = vmul.f32 0.5, %v1261_v42 }
 0x38f   : > { %v1280_v51 = vmul.f32 0.5, %v1264_v45 }
 0x390   : > { %v1278_v9 = vmul.f32 0.5, %v1262_v30 }
 0x391   : > { %v1598_v20 = vpack.c.bf16 %v1280_v51, %v1279_v1 }
 0x392   : > { %v1593_v53 = vpack.c.bf16 %v1278_v9, %v1277_v2 }
 0x393   : > { %1606 = vst [vmem:[%s2749_s18 + $0x38] sm:$0xff] %v1598_v20  }
 0x394   : > { %1605 = vst [vmem:[%s2749_s18 + $0x30] sm:$0xff] %v1593_v53  }
 0x395 PF: > { %s2800_s9 = smov %s2365_s27  ;;  %p21_p3 = scmp.ge.s32.totalorder %s2354_s26, 6  }
 0x396   : > { %s2801_s27 = smov %s2152_s28  ;;  %s2802_s28 = smov %s2156_s29 }
 0x397   : > { %s2803_s29 = smov %s2800_s9  ;;  %s2804_s30 = smov %s2354_s26 }
 0x398   :  { %23 = sbr.rel (!%p21_p3) target bundleno = 6 (0x6), region = 109 }
 0x39f   :  { %1383 = vsyncpa [#allocation3], 1 }
 0x3a0   :  { %1385 = vsyncpa [#allocation3 + $0x1], 1 }
 0x3a1   :  { %1386 = vsyncpa [#allocation7], 1 }
 0x3a2   :  { %1387 = vsyncpa [#allocation10], 1 }
 0x3a3   :  { %1388 = vsyncpa [#allocation4], 1 }
 0x3a4   :  { %1390 = vsyncpa [#allocation4 + $0x1], 1 }

</bundles_post_ra>
